<compile_context>
chip_gen: v6e
topology: v6e:2x2x1
jax: 0.10.0
libtpu: 0.0.40
codegen_flags: <defaults>
</compile_context>

<pallas_src>
import functools

import jax
import jax.numpy as jnp
from jax.experimental import pallas as pl
from jax.experimental.pallas import tpu as pltpu


def _round_up(x, m):
    return (x + m - 1) // m * m


def _largest_divisor(n, cap):
    for d in range(min(n, cap), 0, -1):
        if n % d == 0:
            return d
    return 1


def _pick_lstm_chunk(length, max_chunk=8):
    """Largest divisor of `length` that is a multiple of 8 (so the (bB, Tc, *)
    blocks satisfy the (8,128) rule); falls back to the full length."""
    for d in range(min(length, max_chunk), 0, -1):
        if length % d == 0 and d % 8 == 0:
            return d
    return length


def _pick_lstm_batch_block(batch, max_bb=16):
    """Batch block for the LSTM grid: multiple of 8 (legal (bB, H) h/c blocks)
    or the full batch."""
    for d in range(min(batch, max_bb), 0, -1):
        if batch % d == 0 and d % 8 == 0:
            return d
    return batch


def _maybe_vmem_limit(nbytes, threshold=12 << 20, cap=128 << 20):
    """Only override the scoped-VMEM default when the footprint needs it."""
    if nbytes <= threshold:
        return None
    return min(int(nbytes * 5) // 4 + (2 << 20), cap)


def _block_spec(shape, index_map, single_buffer=False):
    """BlockSpec helper: grid-invariant blocks get a single VMEM buffer
    (double-buffering a never-changing weight block only wastes VMEM)."""
    if single_buffer and hasattr(pl, "Buffered"):
        try:
            return pl.BlockSpec(shape, index_map, pipeline_mode=pl.Buffered(1))
        except TypeError:   # older jax without pipeline_mode on BlockSpec
            pass
    return pl.BlockSpec(shape, index_map)


# ----------------------------------------------------------------------------
# Kernel A: single-layer LSTM recurrence, Tc timesteps per grid step, batch
#           blocked on a leading "parallel" grid axis (megacore on v7x).
#   gates_in : (B, L, 4H)  = embeds @ w_ih + b  (precomputed outside, f32)
#   output x : (B, L, H)   written directly in batch-major layout
# ----------------------------------------------------------------------------
def _lstm_kernel(gates_ref, h0_ref, c0_ref, whh_ref,
                 x_ref, h1_ref, c1_ref, h_sc, c_sc, *, chunk, hidden):
    t = pl.program_id(1)

    @pl.when(t == 0)
    def _():
        h_sc[...] = h0_ref[...]
        c_sc[...] = c0_ref[...]

    h = h_sc[...]                       # (bB, H) f32
    c = c_sc[...]                       # (bB, H) f32
    w_hh = whh_ref[...]                 # (H, 4H) bf16
    H = hidden

    for tt in range(chunk):             # static unroll (chunk <= 8 typically)
        gates = gates_ref[:, tt, :] + jnp.dot(
            h.astype(jnp.bfloat16), w_hh, preferred_element_type=jnp.float32)
        # Gate columns laid out (i | f | o | g): one fused sigmoid + one tanh.
        ifo = jax.nn.sigmoid(gates[:, :3 * H])
        g = jnp.tanh(gates[:, 3 * H:])
        c = ifo[:, H:2 * H] * c + ifo[:, :H] * g
        h = ifo[:, 2 * H:3 * H] * jnp.tanh(c)
        # Store to the VMEM output block; the HBM writeback is one full-tile
        # DMA per grid step regardless, so per-step sublane stores are cheap.
        x_ref[:, tt, :] = h

    h_sc[...] = h
    c_sc[...] = c

    @pl.when(t == pl.num_programs(1) - 1)
    def _():
        h1_ref[...] = h
        c1_ref[...] = c


def lstm_forward(gates_in_blg, h0, c0, w_hh_bf16, max_chunk=8, max_bb=16):
    """gates_in_blg: (B, L, 4H) f32; h0/c0: (B, H) f32; w_hh_bf16: (H, 4H) bf16."""
    B, L, G = gates_in_blg.shape
    H = h0.shape[-1]
    Tc = _pick_lstm_chunk(L, max_chunk)
    bB = _pick_lstm_batch_block(B, max_bb)

    vmem_bytes = (bB * Tc * G * 4 * 2        # gates blocks (double-buffered)
                  + H * G * 2                # w_hh (bf16, single-buffered)
                  + 2 * bB * H * 4           # h0/c0 (single-buffered)
                  + bB * Tc * H * 4 * 2      # x output blocks
                  + 2 * bB * H * 4 * 2       # h1/c1 output blocks
                  + 2 * bB * H * 4)          # scratch

    x_blh, h1, c1 = pl.pallas_call(
        functools.partial(_lstm_kernel, chunk=Tc, hidden=H),
        out_shape=(jax.ShapeDtypeStruct((B, L, H), jnp.float32),
                   jax.ShapeDtypeStruct((B, H), jnp.float32),
                   jax.ShapeDtypeStruct((B, H), jnp.float32)),
        grid_spec=pltpu.PrefetchScalarGridSpec(
            num_scalar_prefetch=0,
            grid=(B // bB, L // Tc),
            in_specs=[pl.BlockSpec((bB, Tc, G), lambda b, t: (b, t, 0)),
                      _block_spec((bB, H), lambda b, t: (b, 0), single_buffer=True),
                      _block_spec((bB, H), lambda b, t: (b, 0), single_buffer=True),
                      _block_spec((H, G), lambda b, t: (0, 0), single_buffer=True)],
            out_specs=[pl.BlockSpec((bB, Tc, H), lambda b, t: (b, t, 0)),
                       pl.BlockSpec((bB, H), lambda b, t: (b, 0)),
                       pl.BlockSpec((bB, H), lambda b, t: (b, 0))],
            scratch_shapes=[pltpu.VMEM((bB, H), jnp.float32),
                            pltpu.VMEM((bB, H), jnp.float32)]),
        compiler_params=pltpu.CompilerParams(
            dimension_semantics=("parallel", "arbitrary"),
            vmem_limit_bytes=_maybe_vmem_limit(vmem_bytes)),
    )(gates_in_blg, h0, c0, w_hh_bf16)
    return x_blh, h1, c1


# ----------------------------------------------------------------------------
# Kernel B: SoftDotAttention (target / softmax / weighted ctx / h_tilde),
#           several batch items per grid step; fused [linear_in | linear_out_x]
#           shared-LHS matmul; bf16 operands, f32 accumulation.
# ----------------------------------------------------------------------------
def _attn_kernel(x_ref, ctx_ref, mask_ref, winx_ref, wwc_ref, out_ref):
    bB, L, H = x_ref.shape
    x = x_ref[...]                                   # (bB, L, H) f32
    ctx = ctx_ref[...].astype(jnp.bfloat16)          # (bB, S, H)
    mask = mask_ref[...]                             # (bB, 1, S)  1.0 where masked

    x2 = x.reshape(bB * L, H).astype(jnp.bfloat16)
    # One matmul over the shared LHS: columns [0:H] = linear_in, [H:2H] = the
    # h-part of linear_out.
    tx = jnp.dot(x2, winx_ref[...], preferred_element_type=jnp.float32)  # (bB*L, 2H)
    target = tx[:, :H].reshape(bB, L, H)
    x_part = tx[:, H:]

    attn = jnp.einsum("blh,bsh->bls", target.astype(jnp.bfloat16), ctx,
                      preferred_element_type=jnp.float32)
    # Large finite negative instead of -inf: avoids NaN if a row is fully masked.
    attn = jnp.where(mask > 0.5, -1e30, attn)
    attn = attn - jnp.max(attn, axis=-1, keepdims=True)
    e = jnp.exp(attn)
    p = e / jnp.sum(e, axis=-1, keepdims=True)

    wc = jnp.einsum("bls,bsh->blh", p.astype(jnp.bfloat16), ctx,
                    preferred_element_type=jnp.float32)
    h_tilde = jnp.tanh(
        jnp.dot(wc.reshape(bB * L, H).astype(jnp.bfloat16), wwc_ref[...],
                preferred_element_type=jnp.float32)
        + x_part)
    out_ref[...] = h_tilde.reshape(bB, L, H)


def attn_forward(x_blh, ctx, mask_b1s, w_in_x_bf16, w_out_wc_bf16,
                 max_bb=8, vmem_budget=40 << 20):
    B, L, H = x_blh.shape
    S = ctx.shape[1]

    def est(bb):
        acts = (bb * L * H * 4 + bb * S * H * 4 + bb * S * 4 + bb * L * H * 4) * 2
        wts = (H * (2 * H) + H * H) * 2             # bf16, single-buffered
        return acts + wts

    bB = _largest_divisor(B, max_bb)
    while bB > 1 and est(bB) > vmem_budget:          # keep v7x's 64 MiB happy
        bB = _largest_divisor(B, bB - 1)

    h_tilde = pl.pallas_call(
        _attn_kernel,
        out_shape=jax.ShapeDtypeStruct((B, L, H), jnp.float32),
        grid_spec=pltpu.PrefetchScalarGridSpec(
            num_scalar_prefetch=0,
            grid=(B // bB,),
            in_specs=[pl.BlockSpec((bB, L, H), lambda b: (b, 0, 0)),
                      pl.BlockSpec((bB, S, H), lambda b: (b, 0, 0)),
                      pl.BlockSpec((bB, 1, S), lambda b: (b, 0, 0)),
                      _block_spec((H, 2 * H), lambda b: (0, 0), single_buffer=True),
                      _block_spec((H, H), lambda b: (0, 0), single_buffer=True)],
            out_specs=pl.BlockSpec((bB, L, H), lambda b: (b, 0, 0))),
        compiler_params=pltpu.CompilerParams(
            dimension_semantics=("parallel",),
            vmem_limit_bytes=_maybe_vmem_limit(est(bB))),
    )(x_blh, ctx, mask_b1s, w_in_x_bf16, w_out_wc_bf16)
    return h_tilde


# ----------------------------------------------------------------------------
# Kernel C: vocab projection as a tiled (B*L, H) x (H, Vp) matmul.
#   Weight pre-padded (once, at prepare_params) to Vp = k * tn; grid is
#   (V tiles, M tiles) with M innermost so each (H, tn) weight slab is streamed
#   from HBM exactly once per core and reused across all M tiles.
# ----------------------------------------------------------------------------
def _proj_kernel(a_ref, w_ref, b_ref, out_ref):
    out_ref[...] = (jnp.dot(a_ref[...], w_ref[...],
                            preferred_element_type=jnp.float32)
                    + b_ref[...])


def projection_forward(h_tilde_blh, w_proj_pad_bf16, b_proj_pad, vocab, proj_tn,
                       max_tm=256, vmem_budget=40 << 20):
    B, L, H = h_tilde_blh.shape
    Vp = w_proj_pad_bf16.shape[1]
    M = B * L
    a = h_tilde_blh.reshape(M, H).astype(jnp.bfloat16)

    tn = proj_tn
    tm = min(max_tm, _round_up(M, 8))

    def est(tm_, tn_):
        return (tm_ * H * 2 + H * tn_ * 2 + tn_ * 4 + tm_ * tn_ * 4) * 2

    while tn > 128 and est(tm, tn) > vmem_budget:    # tn stays a divisor of Vp
        tn //= 2
    while tm > 8 and est(tm, tn) > vmem_budget:
        tm = max(8, _round_up(tm // 2, 8))

    Mp = _round_up(M, tm)
    if Mp != M:
        a = jnp.pad(a, ((0, Mp - M), (0, 0)))        # only the tiny activation pads per call

    cost = pl.CostEstimate(
        flops=2 * Mp * H * Vp,
        transcendentals=0,
        bytes_accessed=Mp * H * 2 + H * Vp * 2 + Vp * 4 + Mp * Vp * 4)

    out = pl.pallas_call(
        _proj_kernel,
        out_shape=jax.ShapeDtypeStruct((Mp, Vp), jnp.float32),
        grid_spec=pltpu.PrefetchScalarGridSpec(
            num_scalar_prefetch=0,
            grid=(Vp // tn, Mp // tm),               # M innermost -> weight slab reuse
            in_specs=[pl.BlockSpec((tm, H), lambda j, i: (i, 0)),
                      pl.BlockSpec((H, tn), lambda j, i: (0, j)),
                      pl.BlockSpec((1, tn), lambda j, i: (0, j))],
            out_specs=pl.BlockSpec((tm, tn), lambda j, i: (i, j))),
        compiler_params=pltpu.CompilerParams(
            dimension_semantics=("parallel", "arbitrary"),
            vmem_limit_bytes=_maybe_vmem_limit(est(tm, tn))),
        cost_estimate=cost,
    )(a, w_proj_pad_bf16, b_proj_pad)
    return out[:M, :vocab].reshape(B, L, vocab)


# ----------------------------------------------------------------------------
# Parameter construction / kernel-side prep + full forward wrapper
# ----------------------------------------------------------------------------
def init_params(key, vocab_size, embedding_size, padding_idx, hidden_size):
    ks = jax.random.split(key, 9)
    scale = 0.1
    emb = scale * jax.random.normal(ks[0], (vocab_size, embedding_size), jnp.float32)
    emb = emb.at[padding_idx].set(0.0)   # nn.Embedding padding_idx -> zero row
    H = hidden_size
    params = dict(
        emb=emb,
        # LSTM gate columns laid out (i | f | o | g) -> one fused sigmoid in-kernel.
        w_ih=scale * jax.random.normal(ks[1], (embedding_size, 4 * H), jnp.float32),
        w_hh=scale * jax.random.normal(ks[2], (H, 4 * H), jnp.float32),
        b=scale * jax.random.normal(ks[3], (1, 4 * H), jnp.float32),  # b_ih + b_hh combined
        w_in=scale * jax.random.normal(ks[4], (H, H), jnp.float32),        # linear_in.weight^T
        w_out_wc=scale * jax.random.normal(ks[5], (H, H), jnp.float32),    # linear_out (wc part)^T
        w_out_x=scale * jax.random.normal(ks[6], (H, H), jnp.float32),     # linear_out (h part)^T
        w_proj=scale * jax.random.normal(ks[7], (H, vocab_size), jnp.float32),
        b_proj=scale * jax.random.normal(ks[8], (1, vocab_size), jnp.float32),
    )
    # TODO(synk): baseline_projection head is defined in __init__ but unused in forward().
    return params


def prepare_params(params, proj_tn_target=1024):
    """One-time kernel-side prep: bf16 weight casts (f32 accumulation kept in every
    matmul), fused attention weight, and vocab-projection padding to a lane-dense
    multiple of the V tile done once here instead of per forward call."""
    H, V = params["w_proj"].shape
    tn = min(proj_tn_target, _round_up(V, 128))
    Vp = _round_up(V, tn)
    return dict(
        emb=params["emb"],
        b=params["b"],
        w_ih=params["w_ih"].astype(jnp.bfloat16),
        w_hh=params["w_hh"].astype(jnp.bfloat16),
        # Fused [linear_in | linear_out(h part)] weight for one shared-LHS matmul.
        w_in_x=jnp.concatenate([params["w_in"], params["w_out_x"]],
                               axis=1).astype(jnp.bfloat16),
        w_out_wc=params["w_out_wc"].astype(jnp.bfloat16),
        w_proj=jnp.pad(params["w_proj"], ((0, 0), (0, Vp - V))).astype(jnp.bfloat16),
        b_proj=jnp.pad(params["b_proj"], ((0, 0), (0, Vp - V))),
        vocab=V,
        proj_tn=tn,
    )


def speaker_decoder_forward(kparams, words, ctx, ctx_mask, h0, c0):
    """words:(B,L) int32; ctx:(B,S,H); ctx_mask:(B,S) bool; h0,c0:(1,B,H)."""
    # Embedding lookup + dropout(identity) -- glue.
    embeds = kparams["emb"][words]                              # (B, L, E) f32

    # Hoisted LSTM input projection: one big MXU matmul (bf16 operands, f32
    # accumulation), emitted batch-major so no transpose is materialized.
    gates_in = (jnp.einsum("ble,eg->blg", embeds.astype(jnp.bfloat16),
                           kparams["w_ih"],
                           preferred_element_type=jnp.float32)
                + kparams["b"])                                 # (B, L, 4H) f32

    # LSTM recurrence (Pallas kernel A): x already in (B, L, H).
    x_blh, h1, c1 = lstm_forward(gates_in, h0[0], c0[0], kparams["w_hh"])

    # Attention (Pallas kernel B).
    mask_b1s = ctx_mask.astype(jnp.float32)[:, None, :]         # (B, 1, S)
    h_tilde = attn_forward(x_blh, ctx, mask_b1s,
                           kparams["w_in_x"], kparams["w_out_wc"])

    # Vocab projection (Pallas kernel C, weight slab reused across all M tiles).
    logits = projection_forward(h_tilde, kparams["w_proj"], kparams["b_proj"],
                                kparams["vocab"], kparams["proj_tn"])
    return logits, h1[None], c1[None]


# ----------------------------------------------------------------------------
# Pure-JAX f32 reference for validation
# ----------------------------------------------------------------------------
def reference_forward(params, words, ctx, ctx_mask, h0, c0):
    H = h0.shape[-1]
    embeds = params["emb"][words]                               # (B, L, E)

    def step(carry, x_t):
        h, c = carry
        gates = x_t @ params["w_ih"] + h @ params["w_hh"] + params["b"]
        i = jax.nn.sigmoid(gates[:, 0 * H:1 * H])
        f = jax.nn.sigmoid(gates[:, 1 * H:2 * H])
        o = jax.nn.sigmoid(gates[:, 2 * H:3 * H])
        g = jnp.tanh(gates[:, 3 * H:4 * H])
        c_new = f * c + i * g
        h_new = o * jnp.tanh(c_new)
        return (h_new, c_new), h_new

    (h1, c1), xs = jax.lax.scan(step, (h0[0], c0[0]),
                                jnp.transpose(embeds, (1, 0, 2)))
    x = jnp.transpose(xs, (1, 0, 2))                            # (B, L, H)

    target = x @ params["w_in"]
    attn = jnp.einsum("blh,bsh->bls", target, ctx)
    attn = jnp.where(ctx_mask[:, None, :], -jnp.inf, attn)
    p = jax.nn.softmax(attn, axis=-1)
    wc = jnp.einsum("bls,bsh->blh", p, ctx)
    h_tilde = jnp.tanh(wc @ params["w_out_wc"] + x @ params["w_out_x"])
    logits = h_tilde @ params["w_proj"] + params["b_proj"]
    return logits, h1[None], c1[None]


if __name__ == "__main__":
    VOCAB, EMB, PAD, HID = 40, 32, 0, 32
    B, L, S = 2, 8, 6

    key = jax.random.PRNGKey(0)
    kp, kw, kc, kh, kcc = jax.random.split(key, 5)

    params = init_params(kp, VOCAB, EMB, PAD, HID)
    kparams = prepare_params(params)

    words = jax.random.randint(kw, (B, L), 0, VOCAB, dtype=jnp.int32)
    ctx = jax.random.normal(kc, (B, S, HID), jnp.float32)
    # mask out the last two context positions of batch item 1
    ctx_mask = jnp.zeros((B, S), jnp.bool_).at[1, S - 2:].set(True)
    h0 = 0.1 * jax.random.normal(kh, (1, B, HID), jnp.float32)
    c0 = 0.1 * jax.random.normal(kcc, (1, B, HID), jnp.float32)

    logits, h1, c1 = speaker_decoder_forward(kparams, words, ctx, ctx_mask, h0, c0)
    jax.block_until_ready((logits, h1, c1))

    ref_logits, ref_h1, ref_c1 = reference_forward(params, words, ctx, ctx_mask, h0, c0)
    assert logits.shape == (B, L, VOCAB)
    assert h1.shape == (1, B, HID) and c1.shape == (1, B, HID)
    # bf16 matmul operands (f32 accumulation) -> looser tolerance vs the f32 reference.
    assert jnp.allclose(logits, ref_logits, atol=3e-2, rtol=3e-2)
    assert jnp.allclose(h1, ref_h1, atol=3e-2, rtol=3e-2)
    assert jnp.allclose(c1, ref_c1, atol=3e-2, rtol=3e-2)

    print("KERNEL_OK")
</pallas_src>

<mosaic_0001>
module attributes {stable_mosaic.version = 11 : i64} {
  func.func @_lstm_kernel(%arg0: i32, %arg1: i32, %arg2: memref<2x8x128xf32, #tpu.memory_space<vmem>>, %arg3: memref<2x32xf32, #tpu.memory_space<vmem>>, %arg4: memref<2x32xf32, #tpu.memory_space<vmem>>, %arg5: memref<32x128xbf16, #tpu.memory_space<vmem>>, %arg6: memref<2x8x32xf32, #tpu.memory_space<vmem>>, %arg7: memref<2x32xf32, #tpu.memory_space<vmem>>, %arg8: memref<2x32xf32, #tpu.memory_space<vmem>>, %arg9: memref<2x32xf32, #tpu.memory_space<vmem>>, %arg10: memref<2x32xf32, #tpu.memory_space<vmem>>) attributes {dimension_semantics = [#tpu.dimension_semantics<parallel>, #tpu.dimension_semantics<arbitrary>], iteration_bounds = array<i64: 1, 1>, scalar_prefetch = 0 : i64, scratch_operands = 2 : i64, tpu.core_type = #tpu.core_type<tc>, window_params = [{transform_indices = @transform_0, window_bounds = array<i64: 2, 8, 128>}, {pipeline_mode = #tpu.pipeline_mode<synchronous>, transform_indices = @transform_1, window_bounds = array<i64: 2, 32>}, {pipeline_mode = #tpu.pipeline_mode<synchronous>, transform_indices = @transform_2, window_bounds = array<i64: 2, 32>}, {pipeline_mode = #tpu.pipeline_mode<synchronous>, transform_indices = @transform_3, window_bounds = array<i64: 32, 128>}, {transform_indices = @transform_4, window_bounds = array<i64: 2, 8, 32>}, {transform_indices = @transform_5, window_bounds = array<i64: 2, 32>}, {transform_indices = @transform_6, window_bounds = array<i64: 2, 32>}]} {
    %c0_i32 = arith.constant 0 : i32
    %0 = arith.cmpi eq, %arg1, %c0_i32 : i32
    %1 = arith.extui %0 : i1 to i32
    %c0_i32_0 = arith.constant 0 : i32
    %2 = arith.cmpi ne, %1, %c0_i32_0 : i32
    scf.if %2 {
      %c0_68 = arith.constant 0 : index
      %c0_69 = arith.constant 0 : index
      %203 = vector.load %arg3[%c0_68, %c0_69] : memref<2x32xf32, #tpu.memory_space<vmem>>, vector<2x32xf32>
      %c0_70 = arith.constant 0 : index
      %c0_71 = arith.constant 0 : index
      %204 = vector.load %arg9[%c0_70, %c0_71] : memref<2x32xf32, #tpu.memory_space<vmem>>, vector<2x32xf32>
      tpu.vector_store %arg9[%c0_70, %c0_71], %203 {strides = array<i32>} : memref<2x32xf32, #tpu.memory_space<vmem>>, vector<2x32xf32>,
      %c0_72 = arith.constant 0 : index
      %c0_73 = arith.constant 0 : index
      %205 = vector.load %arg4[%c0_72, %c0_73] : memref<2x32xf32, #tpu.memory_space<vmem>>, vector<2x32xf32>
      %c0_74 = arith.constant 0 : index
      %c0_75 = arith.constant 0 : index
      %206 = vector.load %arg10[%c0_74, %c0_75] : memref<2x32xf32, #tpu.memory_space<vmem>>, vector<2x32xf32>
      tpu.vector_store %arg10[%c0_74, %c0_75], %205 {strides = array<i32>} : memref<2x32xf32, #tpu.memory_space<vmem>>, vector<2x32xf32>,
    } else {
    }
    %c0 = arith.constant 0 : index
    %c0_1 = arith.constant 0 : index
    %3 = vector.load %arg9[%c0, %c0_1] : memref<2x32xf32, #tpu.memory_space<vmem>>, vector<2x32xf32>
    %c0_2 = arith.constant 0 : index
    %c0_3 = arith.constant 0 : index
    %4 = vector.load %arg10[%c0_2, %c0_3] : memref<2x32xf32, #tpu.memory_space<vmem>>, vector<2x32xf32>
    %c0_4 = arith.constant 0 : index
    %c0_5 = arith.constant 0 : index
    %5 = vector.load %arg5[%c0_4, %c0_5] : memref<32x128xbf16, #tpu.memory_space<vmem>>, vector<32x128xbf16>
    %c0_6 = arith.constant 0 : index
    %c0_7 = arith.constant 0 : index
    %c0_8 = arith.constant 0 : index
    %6 = vector.load %arg2[%c0_6, %c0_7, %c0_8] : memref<2x8x128xf32, #tpu.memory_space<vmem>>, vector<2x1x128xf32>
    %7 = vector.shape_cast %6 : vector<2x1x128xf32> to vector<2x128xf32>
    %8 = arith.truncf %3 : vector<2x32xf32> to vector<2x32xbf16>
    %cst = arith.constant dense<0.000000e+00> : vector<2x128xf32>
    %9 = tpu.matmul %8, %5, %cst {dimension_numbers = #tpu.dot_dimension_numbers<[1], [0], [0], [1], [0, 0, 1, 1], [], []>} : vector<2x32xbf16>, vector<32x128xbf16>, vector<2x128xf32> -> vector<2x128xf32>
    %10 = arith.addf %7, %9 : vector<2x128xf32>
    %11 = vector.extract_strided_slice %10 {offsets = [0, 0], sizes = [2, 96], strides = [1, 1]} : vector<2x128xf32> to vector<2x96xf32>
    %12 = arith.negf %11 : vector<2x96xf32>
    %13 = math.exp %12 : vector<2x96xf32>
    %cst_9 = arith.constant 1.000000e+00 : f32
    %14 = vector.broadcast %cst_9 : f32 to vector<2x96xf32>
    %15 = arith.addf %14, %13 : vector<2x96xf32>
    %16 = arith.divf %14, %15 : vector<2x96xf32>
    %17 = vector.extract_strided_slice %10 {offsets = [0, 96], sizes = [2, 32], strides = [1, 1]} : vector<2x128xf32> to vector<2x32xf32>
    %18 = math.tanh %17 : vector<2x32xf32>
    %19 = vector.extract_strided_slice %16 {offsets = [0, 32], sizes = [2, 32], strides = [1, 1]} : vector<2x96xf32> to vector<2x32xf32>
    %20 = arith.mulf %19, %4 : vector<2x32xf32>
    %21 = vector.extract_strided_slice %16 {offsets = [0, 0], sizes = [2, 32], strides = [1, 1]} : vector<2x96xf32> to vector<2x32xf32>
    %22 = arith.mulf %21, %18 : vector<2x32xf32>
    %23 = arith.addf %20, %22 : vector<2x32xf32>
    %24 = vector.extract_strided_slice %16 {offsets = [0, 64], sizes = [2, 32], strides = [1, 1]} : vector<2x96xf32> to vector<2x32xf32>
    %25 = math.tanh %23 : vector<2x32xf32>
    %26 = arith.mulf %24, %25 : vector<2x32xf32>
    %c0_10 = arith.constant 0 : index
    %c0_11 = arith.constant 0 : index
    %c0_12 = arith.constant 0 : index
    %27 = vector.load %arg6[%c0_10, %c0_11, %c0_12] : memref<2x8x32xf32, #tpu.memory_space<vmem>>, vector<2x1x32xf32>
    %28 = vector.shape_cast %27 : vector<2x1x32xf32> to vector<2x32xf32>
    %29 = vector.shape_cast %26 : vector<2x32xf32> to vector<2x1x32xf32>
    tpu.vector_store %arg6[%c0_10, %c0_11, %c0_12], %29 {strides = array<i32>} : memref<2x8x32xf32, #tpu.memory_space<vmem>>, vector<2x1x32xf32>,
    %c0_13 = arith.constant 0 : index
    %c1 = arith.constant 1 : index
    %c0_14 = arith.constant 0 : index
    %30 = vector.load %arg2[%c0_13, %c1, %c0_14] : memref<2x8x128xf32, #tpu.memory_space<vmem>>, vector<2x1x128xf32>
    %31 = vector.shape_cast %30 : vector<2x1x128xf32> to vector<2x128xf32>
    %32 = arith.truncf %26 : vector<2x32xf32> to vector<2x32xbf16>
    %cst_15 = arith.constant dense<0.000000e+00> : vector<2x128xf32>
    %33 = tpu.matmul %32, %5, %cst_15 {dimension_numbers = #tpu.dot_dimension_numbers<[1], [0], [0], [1], [0, 0, 1, 1], [], []>} : vector<2x32xbf16>, vector<32x128xbf16>, vector<2x128xf32> -> vector<2x128xf32>
    %34 = arith.addf %31, %33 : vector<2x128xf32>
    %35 = vector.extract_strided_slice %34 {offsets = [0, 0], sizes = [2, 96], strides = [1, 1]} : vector<2x128xf32> to vector<2x96xf32>
    %36 = arith.negf %35 : vector<2x96xf32>
    %37 = math.exp %36 : vector<2x96xf32>
    %cst_16 = arith.constant 1.000000e+00 : f32
    %38 = vector.broadcast %cst_16 : f32 to vector<2x96xf32>
    %39 = arith.addf %38, %37 : vector<2x96xf32>
    %40 = arith.divf %38, %39 : vector<2x96xf32>
    %41 = vector.extract_strided_slice %34 {offsets = [0, 96], sizes = [2, 32], strides = [1, 1]} : vector<2x128xf32> to vector<2x32xf32>
    %42 = math.tanh %41 : vector<2x32xf32>
    %43 = vector.extract_strided_slice %40 {offsets = [0, 32], sizes = [2, 32], strides = [1, 1]} : vector<2x96xf32> to vector<2x32xf32>
    %44 = arith.mulf %43, %23 : vector<2x32xf32>
    %45 = vector.extract_strided_slice %40 {offsets = [0, 0], sizes = [2, 32], strides = [1, 1]} : vector<2x96xf32> to vector<2x32xf32>
    %46 = arith.mulf %45, %42 : vector<2x32xf32>
    %47 = arith.addf %44, %46 : vector<2x32xf32>
    %48 = vector.extract_strided_slice %40 {offsets = [0, 64], sizes = [2, 32], strides = [1, 1]} : vector<2x96xf32> to vector<2x32xf32>
    %49 = math.tanh %47 : vector<2x32xf32>
    %50 = arith.mulf %48, %49 : vector<2x32xf32>
    %c0_17 = arith.constant 0 : index
    %c1_18 = arith.constant 1 : index
    %c0_19 = arith.constant 0 : index
    %51 = vector.load %arg6[%c0_17, %c1_18, %c0_19] : memref<2x8x32xf32, #tpu.memory_space<vmem>>, vector<2x1x32xf32>
    %52 = vector.shape_cast %51 : vector<2x1x32xf32> to vector<2x32xf32>
    %53 = vector.shape_cast %50 : vector<2x32xf32> to vector<2x1x32xf32>
    tpu.vector_store %arg6[%c0_17, %c1_18, %c0_19], %53 {strides = array<i32>} : memref<2x8x32xf32, #tpu.memory_space<vmem>>, vector<2x1x32xf32>,
    %c0_20 = arith.constant 0 : index
    %c2 = arith.constant 2 : index
    %c0_21 = arith.constant 0 : index
    %54 = vector.load %arg2[%c0_20, %c2, %c0_21] : memref<2x8x128xf32, #tpu.memory_space<vmem>>, vector<2x1x128xf32>
    %55 = vector.shape_cast %54 : vector<2x1x128xf32> to vector<2x128xf32>
    %56 = arith.truncf %50 : vector<2x32xf32> to vector<2x32xbf16>
    %cst_22 = arith.constant dense<0.000000e+00> : vector<2x128xf32>
    %57 = tpu.matmul %56, %5, %cst_22 {dimension_numbers = #tpu.dot_dimension_numbers<[1], [0], [0], [1], [0, 0, 1, 1], [], []>} : vector<2x32xbf16>, vector<32x128xbf16>, vector<2x128xf32> -> vector<2x128xf32>
    %58 = arith.addf %55, %57 : vector<2x128xf32>
    %59 = vector.extract_strided_slice %58 {offsets = [0, 0], sizes = [2, 96], strides = [1, 1]} : vector<2x128xf32> to vector<2x96xf32>
    %60 = arith.negf %59 : vector<2x96xf32>
    %61 = math.exp %60 : vector<2x96xf32>
    %cst_23 = arith.constant 1.000000e+00 : f32
    %62 = vector.broadcast %cst_23 : f32 to vector<2x96xf32>
    %63 = arith.addf %62, %61 : vector<2x96xf32>
    %64 = arith.divf %62, %63 : vector<2x96xf32>
    %65 = vector.extract_strided_slice %58 {offsets = [0, 96], sizes = [2, 32], strides = [1, 1]} : vector<2x128xf32> to vector<2x32xf32>
    %66 = math.tanh %65 : vector<2x32xf32>
    %67 = vector.extract_strided_slice %64 {offsets = [0, 32], sizes = [2, 32], strides = [1, 1]} : vector<2x96xf32> to vector<2x32xf32>
    %68 = arith.mulf %67, %47 : vector<2x32xf32>
    %69 = vector.extract_strided_slice %64 {offsets = [0, 0], sizes = [2, 32], strides = [1, 1]} : vector<2x96xf32> to vector<2x32xf32>
    %70 = arith.mulf %69, %66 : vector<2x32xf32>
    %71 = arith.addf %68, %70 : vector<2x32xf32>
    %72 = vector.extract_strided_slice %64 {offsets = [0, 64], sizes = [2, 32], strides = [1, 1]} : vector<2x96xf32> to vector<2x32xf32>
    %73 = math.tanh %71 : vector<2x32xf32>
    %74 = arith.mulf %72, %73 : vector<2x32xf32>
    %c0_24 = arith.constant 0 : index
    %c2_25 = arith.constant 2 : index
    %c0_26 = arith.constant 0 : index
    %75 = vector.load %arg6[%c0_24, %c2_25, %c0_26] : memref<2x8x32xf32, #tpu.memory_space<vmem>>, vector<2x1x32xf32>
    %76 = vector.shape_cast %75 : vector<2x1x32xf32> to vector<2x32xf32>
    %77 = vector.shape_cast %74 : vector<2x32xf32> to vector<2x1x32xf32>
    tpu.vector_store %arg6[%c0_24, %c2_25, %c0_26], %77 {strides = array<i32>} : memref<2x8x32xf32, #tpu.memory_space<vmem>>, vector<2x1x32xf32>,
    %c0_27 = arith.constant 0 : index
    %c3 = arith.constant 3 : index
    %c0_28 = arith.constant 0 : index
    %78 = vector.load %arg2[%c0_27, %c3, %c0_28] : memref<2x8x128xf32, #tpu.memory_space<vmem>>, vector<2x1x128xf32>
    %79 = vector.shape_cast %78 : vector<2x1x128xf32> to vector<2x128xf32>
    %80 = arith.truncf %74 : vector<2x32xf32> to vector<2x32xbf16>
    %cst_29 = arith.constant dense<0.000000e+00> : vector<2x128xf32>
    %81 = tpu.matmul %80, %5, %cst_29 {dimension_numbers = #tpu.dot_dimension_numbers<[1], [0], [0], [1], [0, 0, 1, 1], [], []>} : vector<2x32xbf16>, vector<32x128xbf16>, vector<2x128xf32> -> vector<2x128xf32>
    %82 = arith.addf %79, %81 : vector<2x128xf32>
    %83 = vector.extract_strided_slice %82 {offsets = [0, 0], sizes = [2, 96], strides = [1, 1]} : vector<2x128xf32> to vector<2x96xf32>
    %84 = arith.negf %83 : vector<2x96xf32>
    %85 = math.exp %84 : vector<2x96xf32>
    %cst_30 = arith.constant 1.000000e+00 : f32
    %86 = vector.broadcast %cst_30 : f32 to vector<2x96xf32>
    %87 = arith.addf %86, %85 : vector<2x96xf32>
    %88 = arith.divf %86, %87 : vector<2x96xf32>
    %89 = vector.extract_strided_slice %82 {offsets = [0, 96], sizes = [2, 32], strides = [1, 1]} : vector<2x128xf32> to vector<2x32xf32>
    %90 = math.tanh %89 : vector<2x32xf32>
    %91 = vector.extract_strided_slice %88 {offsets = [0, 32], sizes = [2, 32], strides = [1, 1]} : vector<2x96xf32> to vector<2x32xf32>
    %92 = arith.mulf %91, %71 : vector<2x32xf32>
    %93 = vector.extract_strided_slice %88 {offsets = [0, 0], sizes = [2, 32], strides = [1, 1]} : vector<2x96xf32> to vector<2x32xf32>
    %94 = arith.mulf %93, %90 : vector<2x32xf32>
    %95 = arith.addf %92, %94 : vector<2x32xf32>
    %96 = vector.extract_strided_slice %88 {offsets = [0, 64], sizes = [2, 32], strides = [1, 1]} : vector<2x96xf32> to vector<2x32xf32>
    %97 = math.tanh %95 : vector<2x32xf32>
    %98 = arith.mulf %96, %97 : vector<2x32xf32>
    %c0_31 = arith.constant 0 : index
    %c3_32 = arith.constant 3 : index
    %c0_33 = arith.constant 0 : index
    %99 = vector.load %arg6[%c0_31, %c3_32, %c0_33] : memref<2x8x32xf32, #tpu.memory_space<vmem>>, vector<2x1x32xf32>
    %100 = vector.shape_cast %99 : vector<2x1x32xf32> to vector<2x32xf32>
    %101 = vector.shape_cast %98 : vector<2x32xf32> to vector<2x1x32xf32>
    tpu.vector_store %arg6[%c0_31, %c3_32, %c0_33], %101 {strides = array<i32>} : memref<2x8x32xf32, #tpu.memory_space<vmem>>, vector<2x1x32xf32>,
    %c0_34 = arith.constant 0 : index
    %c4 = arith.constant 4 : index
    %c0_35 = arith.constant 0 : index
    %102 = vector.load %arg2[%c0_34, %c4, %c0_35] : memref<2x8x128xf32, #tpu.memory_space<vmem>>, vector<2x1x128xf32>
    %103 = vector.shape_cast %102 : vector<2x1x128xf32> to vector<2x128xf32>
    %104 = arith.truncf %98 : vector<2x32xf32> to vector<2x32xbf16>
    %cst_36 = arith.constant dense<0.000000e+00> : vector<2x128xf32>
    %105 = tpu.matmul %104, %5, %cst_36 {dimension_numbers = #tpu.dot_dimension_numbers<[1], [0], [0], [1], [0, 0, 1, 1], [], []>} : vector<2x32xbf16>, vector<32x128xbf16>, vector<2x128xf32> -> vector<2x128xf32>
    %106 = arith.addf %103, %105 : vector<2x128xf32>
    %107 = vector.extract_strided_slice %106 {offsets = [0, 0], sizes = [2, 96], strides = [1, 1]} : vector<2x128xf32> to vector<2x96xf32>
    %108 = arith.negf %107 : vector<2x96xf32>
    %109 = math.exp %108 : vector<2x96xf32>
    %cst_37 = arith.constant 1.000000e+00 : f32
    %110 = vector.broadcast %cst_37 : f32 to vector<2x96xf32>
    %111 = arith.addf %110, %109 : vector<2x96xf32>
    %112 = arith.divf %110, %111 : vector<2x96xf32>
    %113 = vector.extract_strided_slice %106 {offsets = [0, 96], sizes = [2, 32], strides = [1, 1]} : vector<2x128xf32> to vector<2x32xf32>
    %114 = math.tanh %113 : vector<2x32xf32>
    %115 = vector.extract_strided_slice %112 {offsets = [0, 32], sizes = [2, 32], strides = [1, 1]} : vector<2x96xf32> to vector<2x32xf32>
    %116 = arith.mulf %115, %95 : vector<2x32xf32>
    %117 = vector.extract_strided_slice %112 {offsets = [0, 0], sizes = [2, 32], strides = [1, 1]} : vector<2x96xf32> to vector<2x32xf32>
    %118 = arith.mulf %117, %114 : vector<2x32xf32>
    %119 = arith.addf %116, %118 : vector<2x32xf32>
    %120 = vector.extract_strided_slice %112 {offsets = [0, 64], sizes = [2, 32], strides = [1, 1]} : vector<2x96xf32> to vector<2x32xf32>
    %121 = math.tanh %119 : vector<2x32xf32>
    %122 = arith.mulf %120, %121 : vector<2x32xf32>
    %c0_38 = arith.constant 0 : index
    %c4_39 = arith.constant 4 : index
    %c0_40 = arith.constant 0 : index
    %123 = vector.load %arg6[%c0_38, %c4_39, %c0_40] : memref<2x8x32xf32, #tpu.memory_space<vmem>>, vector<2x1x32xf32>
    %124 = vector.shape_cast %123 : vector<2x1x32xf32> to vector<2x32xf32>
    %125 = vector.shape_cast %122 : vector<2x32xf32> to vector<2x1x32xf32>
    tpu.vector_store %arg6[%c0_38, %c4_39, %c0_40], %125 {strides = array<i32>} : memref<2x8x32xf32, #tpu.memory_space<vmem>>, vector<2x1x32xf32>,
    %c0_41 = arith.constant 0 : index
    %c5 = arith.constant 5 : index
    %c0_42 = arith.constant 0 : index
    %126 = vector.load %arg2[%c0_41, %c5, %c0_42] : memref<2x8x128xf32, #tpu.memory_space<vmem>>, vector<2x1x128xf32>
    %127 = vector.shape_cast %126 : vector<2x1x128xf32> to vector<2x128xf32>
    %128 = arith.truncf %122 : vector<2x32xf32> to vector<2x32xbf16>
    %cst_43 = arith.constant dense<0.000000e+00> : vector<2x128xf32>
    %129 = tpu.matmul %128, %5, %cst_43 {dimension_numbers = #tpu.dot_dimension_numbers<[1], [0], [0], [1], [0, 0, 1, 1], [], []>} : vector<2x32xbf16>, vector<32x128xbf16>, vector<2x128xf32> -> vector<2x128xf32>
    %130 = arith.addf %127, %129 : vector<2x128xf32>
    %131 = vector.extract_strided_slice %130 {offsets = [0, 0], sizes = [2, 96], strides = [1, 1]} : vector<2x128xf32> to vector<2x96xf32>
    %132 = arith.negf %131 : vector<2x96xf32>
    %133 = math.exp %132 : vector<2x96xf32>
    %cst_44 = arith.constant 1.000000e+00 : f32
    %134 = vector.broadcast %cst_44 : f32 to vector<2x96xf32>
    %135 = arith.addf %134, %133 : vector<2x96xf32>
    %136 = arith.divf %134, %135 : vector<2x96xf32>
    %137 = vector.extract_strided_slice %130 {offsets = [0, 96], sizes = [2, 32], strides = [1, 1]} : vector<2x128xf32> to vector<2x32xf32>
    %138 = math.tanh %137 : vector<2x32xf32>
    %139 = vector.extract_strided_slice %136 {offsets = [0, 32], sizes = [2, 32], strides = [1, 1]} : vector<2x96xf32> to vector<2x32xf32>
    %140 = arith.mulf %139, %119 : vector<2x32xf32>
    %141 = vector.extract_strided_slice %136 {offsets = [0, 0], sizes = [2, 32], strides = [1, 1]} : vector<2x96xf32> to vector<2x32xf32>
    %142 = arith.mulf %141, %138 : vector<2x32xf32>
    %143 = arith.addf %140, %142 : vector<2x32xf32>
    %144 = vector.extract_strided_slice %136 {offsets = [0, 64], sizes = [2, 32], strides = [1, 1]} : vector<2x96xf32> to vector<2x32xf32>
    %145 = math.tanh %143 : vector<2x32xf32>
    %146 = arith.mulf %144, %145 : vector<2x32xf32>
    %c0_45 = arith.constant 0 : index
    %c5_46 = arith.constant 5 : index
    %c0_47 = arith.constant 0 : index
    %147 = vector.load %arg6[%c0_45, %c5_46, %c0_47] : memref<2x8x32xf32, #tpu.memory_space<vmem>>, vector<2x1x32xf32>
    %148 = vector.shape_cast %147 : vector<2x1x32xf32> to vector<2x32xf32>
    %149 = vector.shape_cast %146 : vector<2x32xf32> to vector<2x1x32xf32>
    tpu.vector_store %arg6[%c0_45, %c5_46, %c0_47], %149 {strides = array<i32>} : memref<2x8x32xf32, #tpu.memory_space<vmem>>, vector<2x1x32xf32>,
    %c0_48 = arith.constant 0 : index
    %c6 = arith.constant 6 : index
    %c0_49 = arith.constant 0 : index
    %150 = vector.load %arg2[%c0_48, %c6, %c0_49] : memref<2x8x128xf32, #tpu.memory_space<vmem>>, vector<2x1x128xf32>
    %151 = vector.shape_cast %150 : vector<2x1x128xf32> to vector<2x128xf32>
    %152 = arith.truncf %146 : vector<2x32xf32> to vector<2x32xbf16>
    %cst_50 = arith.constant dense<0.000000e+00> : vector<2x128xf32>
    %153 = tpu.matmul %152, %5, %cst_50 {dimension_numbers = #tpu.dot_dimension_numbers<[1], [0], [0], [1], [0, 0, 1, 1], [], []>} : vector<2x32xbf16>, vector<32x128xbf16>, vector<2x128xf32> -> vector<2x128xf32>
    %154 = arith.addf %151, %153 : vector<2x128xf32>
    %155 = vector.extract_strided_slice %154 {offsets = [0, 0], sizes = [2, 96], strides = [1, 1]} : vector<2x128xf32> to vector<2x96xf32>
    %156 = arith.negf %155 : vector<2x96xf32>
    %157 = math.exp %156 : vector<2x96xf32>
    %cst_51 = arith.constant 1.000000e+00 : f32
    %158 = vector.broadcast %cst_51 : f32 to vector<2x96xf32>
    %159 = arith.addf %158, %157 : vector<2x96xf32>
    %160 = arith.divf %158, %159 : vector<2x96xf32>
    %161 = vector.extract_strided_slice %154 {offsets = [0, 96], sizes = [2, 32], strides = [1, 1]} : vector<2x128xf32> to vector<2x32xf32>
    %162 = math.tanh %161 : vector<2x32xf32>
    %163 = vector.extract_strided_slice %160 {offsets = [0, 32], sizes = [2, 32], strides = [1, 1]} : vector<2x96xf32> to vector<2x32xf32>
    %164 = arith.mulf %163, %143 : vector<2x32xf32>
    %165 = vector.extract_strided_slice %160 {offsets = [0, 0], sizes = [2, 32], strides = [1, 1]} : vector<2x96xf32> to vector<2x32xf32>
    %166 = arith.mulf %165, %162 : vector<2x32xf32>
    %167 = arith.addf %164, %166 : vector<2x32xf32>
    %168 = vector.extract_strided_slice %160 {offsets = [0, 64], sizes = [2, 32], strides = [1, 1]} : vector<2x96xf32> to vector<2x32xf32>
    %169 = math.tanh %167 : vector<2x32xf32>
    %170 = arith.mulf %168, %169 : vector<2x32xf32>
    %c0_52 = arith.constant 0 : index
    %c6_53 = arith.constant 6 : index
    %c0_54 = arith.constant 0 : index
    %171 = vector.load %arg6[%c0_52, %c6_53, %c0_54] : memref<2x8x32xf32, #tpu.memory_space<vmem>>, vector<2x1x32xf32>
    %172 = vector.shape_cast %171 : vector<2x1x32xf32> to vector<2x32xf32>
    %173 = vector.shape_cast %170 : vector<2x32xf32> to vector<2x1x32xf32>
    tpu.vector_store %arg6[%c0_52, %c6_53, %c0_54], %173 {strides = array<i32>} : memref<2x8x32xf32, #tpu.memory_space<vmem>>, vector<2x1x32xf32>,
    %c0_55 = arith.constant 0 : index
    %c7 = arith.constant 7 : index
    %c0_56 = arith.constant 0 : index
    %174 = vector.load %arg2[%c0_55, %c7, %c0_56] : memref<2x8x128xf32, #tpu.memory_space<vmem>>, vector<2x1x128xf32>
    %175 = vector.shape_cast %174 : vector<2x1x128xf32> to vector<2x128xf32>
    %176 = arith.truncf %170 : vector<2x32xf32> to vector<2x32xbf16>
    %cst_57 = arith.constant dense<0.000000e+00> : vector<2x128xf32>
    %177 = tpu.matmul %176, %5, %cst_57 {dimension_numbers = #tpu.dot_dimension_numbers<[1], [0], [0], [1], [0, 0, 1, 1], [], []>} : vector<2x32xbf16>, vector<32x128xbf16>, vector<2x128xf32> -> vector<2x128xf32>
    %178 = arith.addf %175, %177 : vector<2x128xf32>
    %179 = vector.extract_strided_slice %178 {offsets = [0, 0], sizes = [2, 96], strides = [1, 1]} : vector<2x128xf32> to vector<2x96xf32>
    %180 = arith.negf %179 : vector<2x96xf32>
    %181 = math.exp %180 : vector<2x96xf32>
    %cst_58 = arith.constant 1.000000e+00 : f32
    %182 = vector.broadcast %cst_58 : f32 to vector<2x96xf32>
    %183 = arith.addf %182, %181 : vector<2x96xf32>
    %184 = arith.divf %182, %183 : vector<2x96xf32>
    %185 = vector.extract_strided_slice %178 {offsets = [0, 96], sizes = [2, 32], strides = [1, 1]} : vector<2x128xf32> to vector<2x32xf32>
    %186 = math.tanh %185 : vector<2x32xf32>
    %187 = vector.extract_strided_slice %184 {offsets = [0, 32], sizes = [2, 32], strides = [1, 1]} : vector<2x96xf32> to vector<2x32xf32>
    %188 = arith.mulf %187, %167 : vector<2x32xf32>
    %189 = vector.extract_strided_slice %184 {offsets = [0, 0], sizes = [2, 32], strides = [1, 1]} : vector<2x96xf32> to vector<2x32xf32>
    %190 = arith.mulf %189, %186 : vector<2x32xf32>
    %191 = arith.addf %188, %190 : vector<2x32xf32>
    %192 = vector.extract_strided_slice %184 {offsets = [0, 64], sizes = [2, 32], strides = [1, 1]} : vector<2x96xf32> to vector<2x32xf32>
    %193 = math.tanh %191 : vector<2x32xf32>
    %194 = arith.mulf %192, %193 : vector<2x32xf32>
    %c0_59 = arith.constant 0 : index
    %c7_60 = arith.constant 7 : index
    %c0_61 = arith.constant 0 : index
    %195 = vector.load %arg6[%c0_59, %c7_60, %c0_61] : memref<2x8x32xf32, #tpu.memory_space<vmem>>, vector<2x1x32xf32>
    %196 = vector.shape_cast %195 : vector<2x1x32xf32> to vector<2x32xf32>
    %197 = vector.shape_cast %194 : vector<2x32xf32> to vector<2x1x32xf32>
    tpu.vector_store %arg6[%c0_59, %c7_60, %c0_61], %197 {strides = array<i32>} : memref<2x8x32xf32, #tpu.memory_space<vmem>>, vector<2x1x32xf32>,
    %c0_62 = arith.constant 0 : index
    %c0_63 = arith.constant 0 : index
    %198 = vector.load %arg9[%c0_62, %c0_63] : memref<2x32xf32, #tpu.memory_space<vmem>>, vector<2x32xf32>
    tpu.vector_store %arg9[%c0_62, %c0_63], %194 {strides = array<i32>} : memref<2x32xf32, #tpu.memory_space<vmem>>, vector<2x32xf32>,
    %c0_64 = arith.constant 0 : index
    %c0_65 = arith.constant 0 : index
    %199 = vector.load %arg10[%c0_64, %c0_65] : memref<2x32xf32, #tpu.memory_space<vmem>>, vector<2x32xf32>
    tpu.vector_store %arg10[%c0_64, %c0_65], %191 {strides = array<i32>} : memref<2x32xf32, #tpu.memory_space<vmem>>, vector<2x32xf32>,
    %c0_i32_66 = arith.constant 0 : i32
    %200 = arith.cmpi eq, %arg1, %c0_i32_66 : i32
    %201 = arith.extui %200 : i1 to i32
    %c0_i32_67 = arith.constant 0 : i32
    %202 = arith.cmpi ne, %201, %c0_i32_67 : i32
    scf.if %202 {
      %c0_68 = arith.constant 0 : index
      %c0_69 = arith.constant 0 : index
      %203 = vector.load %arg7[%c0_68, %c0_69] : memref<2x32xf32, #tpu.memory_space<vmem>>, vector<2x32xf32>
      tpu.vector_store %arg7[%c0_68, %c0_69], %194 {strides = array<i32>} : memref<2x32xf32, #tpu.memory_space<vmem>>, vector<2x32xf32>,
      %c0_70 = arith.constant 0 : index
      %c0_71 = arith.constant 0 : index
      %204 = vector.load %arg8[%c0_70, %c0_71] : memref<2x32xf32, #tpu.memory_space<vmem>>, vector<2x32xf32>
      tpu.vector_store %arg8[%c0_70, %c0_71], %191 {strides = array<i32>} : memref<2x32xf32, #tpu.memory_space<vmem>>, vector<2x32xf32>,
    } else {
    }
    return
  }
  func.func @transform_0(%arg0: i32, %arg1: i32) -> (i32, i32, i32) {
    %c0_i32 = arith.constant 0 : i32
    %c0_i32_0 = arith.constant 0 : i32
    return %arg0, %arg1, %c0_i32 : i32, i32, i32
  }
  func.func @transform_1(%arg0: i32, %arg1: i32) -> (i32, i32) {
    %c0_i32 = arith.constant 0 : i32
    %c0_i32_0 = arith.constant 0 : i32
    return %arg0, %c0_i32 : i32, i32
  }
  func.func @transform_2(%arg0: i32, %arg1: i32) -> (i32, i32) {
    %c0_i32 = arith.constant 0 : i32
    %c0_i32_0 = arith.constant 0 : i32
    return %arg0, %c0_i32 : i32, i32
  }
  func.func @transform_3(%arg0: i32, %arg1: i32) -> (i32, i32) {
    %c0_i32 = arith.constant 0 : i32
    %c0_i32_0 = arith.constant 0 : i32
    %c0_i32_1 = arith.constant 0 : i32
    return %c0_i32, %c0_i32_0 : i32, i32
  }
  func.func @transform_4(%arg0: i32, %arg1: i32) -> (i32, i32, i32) {
    %c0_i32 = arith.constant 0 : i32
    %c0_i32_0 = arith.constant 0 : i32
    return %arg0, %arg1, %c0_i32 : i32, i32, i32
  }
  func.func @transform_5(%arg0: i32, %arg1: i32) -> (i32, i32) {
    %c0_i32 = arith.constant 0 : i32
    %c0_i32_0 = arith.constant 0 : i32
    return %arg0, %c0_i32 : i32, i32
  }
  func.func @transform_6(%arg0: i32, %arg1: i32) -> (i32, i32) {
    %c0_i32 = arith.constant 0 : i32
    %c0_i32_0 = arith.constant 0 : i32
    return %arg0, %c0_i32 : i32, i32
  }
}

</mosaic_0001>

<bundles_post_ra>
// kernel: tpu_custom_call.1
= control target key start
LH: loop header
LB: loop body
LE: loop exit
PB: predicated region body
PF: predicated region fallthrough
CT: control target
= control target key end

     0   :  { %12 = vsyncpa [#allocation5], 0  ;;  %s1825_s0 = inlined_call_operand.hbm [shape: f32[2,8,128], index: 0, kind: input, shape index: {}]   ;;  %s1826_s1 = inlined_call_operand.hbm [shape: f32[2,32], index: 1, kind: input, shape index: {}]   ;;  %s1827_s2 = inlined_call_operand.vmem [shape: f32[2,32], index: 2, kind: input, shape index: {}]   ;;  %s1828_s3 = inlined_call_operand.hbm [shape: bf16[32,128], index: 3, kind: input, shape index: {}]   ;;  %s1829_s4 = inlined_call_operand.hbm [shape: f32[2,8,32], index: 4, kind: output, shape index: {0}]   ;;  %s1830_s5 = inlined_call_operand.hbm [shape: f32[2,32], index: 5, kind: output, shape index: {1}]   ;;  %s1831_s6 = inlined_call_operand.hbm [shape: f32[2,32], index: 6, kind: output, shape index: {2}]  }
   0x1   :  { %13 = vsyncpa [#allocation8], 0 }
   0x2   :  { %14 = vsyncpa [#allocation6], 0 }
   0x3   :  { %15 = vsyncpa [#allocation12], 0  ;;  %s1501_s21 = smov [#allocation7]   ;;  %s1502_s23 = smov [#allocation4]  }
   0x4   :  { %s34_s22 = sshll.u32 %s1501_s21, 4  ;;  %s21_s24 = sshll.u32 %s1502_s23, 4  ;;  %s35_s22 = int_to_ptr.vmem [resolvable:$true] %s34_s22  ;;  %s22_s24 = int_to_ptr.vmem [resolvable:$true] %s21_s24 }
   0x5   :  { %s1381_s25 = scalar_lea.vmem %s35_s22, 32  ;;  %p1386_p1 = scmp.lt.s32.totalorder %s35_s22, %s35_s22 }
   0x6   :  { %p1382_p0 = scmp.ne.s32.totalorder %s35_s22, %s1381_s25  ;;  %p1387_p2 = scmp.lt.s32.totalorder %s1381_s25, %s1381_s25 }
   0x8   :  { %p1388_p3 = por %p1387_p2, %p1386_p1 }
   0xa   :  { %p1389_p4 = pnand %p1388_p3, %p1382_p0 }
   0xc   :  { %1392 = shalt.err (!%p1389_p4)
}
   0xd   :  { %37 = dma.hbm_to_vmem [thread:$0]  %s1826_s1, 32, %s35_s22, [#allocation8]  }
   0xe   :  { %s1401_s28 = scalar_lea.vmem %s22_s24, 256  ;;  %p1406_p6 = scmp.lt.s32.totalorder %s22_s24, %s22_s24 }
   0xf   :  { %p1402_p5 = scmp.ne.s32.totalorder %s22_s24, %s1401_s28  ;;  %p1407_p7 = scmp.lt.s32.totalorder %s1401_s28, %s1401_s28 }
  0x11   :  { %p1408_p8 = por %p1407_p7, %p1406_p6 }
  0x13   :  { %p1409_p9 = pnand %p1408_p8, %p1402_p5 }
  0x15   :  { %1412 = shalt.err (!%p1409_p9)
}
  0x16   :  { %s1503_s29 = smov 128   ;;  %s1504_s30 = smov 8  }
  0x17   :  { %27 = dma.hbm_to_vmem [thread:$0]  %s1825_s0, 256, %s22_s24, [#allocation5], %s1503_s29, %s1503_s29, %s1504_s30  }
  0x18   :  { %s1505_s9 = smov [#allocation9]  }
  0x19   :  { %s45_s10 = sshll.u32 %s1505_s9, 4  ;;  %s46_s10 = int_to_ptr.vmem [resolvable:$true] %s45_s10 }
  0x1a   :  { %s1421_s1 = scalar_lea.vmem %s46_s10, 256  ;;  %p1426_p11 = scmp.lt.s32.totalorder %s46_s10, %s46_s10 }
  0x1b   :  { %p1422_p10 = scmp.ne.s32.totalorder %s46_s10, %s1421_s1  ;;  %p1427_p12 = scmp.lt.s32.totalorder %s1421_s1, %s1421_s1 }
  0x1d   :  { %p1428_p13 = por %p1427_p12, %p1426_p11 }
  0x1f   :  { %p1429_p0 = pnand %p1428_p13, %p1422_p10 }
  0x21   :  { %1432 = shalt.err (!%p1429_p0)
}
  0x22   :  { %s1506_s11 = smov 64   ;;  %s1507_s12 = smov 4  }
  0x23   :  { %51 = dma.hbm_to_vmem [thread:$0]  %s1828_s3, 256, %s46_s10, [#allocation8], %s1506_s11, %s1506_s11, %s1507_s12  }
  0x24   :  { %1493 = dma.done.wait [#allocation5], 256  }
  0x25   :  { %1494 = vsyncadd [#allocation5], 4294967040 }
  0x26   :  { %1495 = dma.done.wait [#allocation8], 288  }
  0x27   :  { %1496 = vsyncadd [#allocation8], 4294967008  ;;  %v1508_v0 = vmov 0.0   ;;  %vm1509_vm0 = vmmov 0   ;;  %v1570_v1 = vld [vmem:[#allocation9 + $0x8] sm:$0xff]   ;;  %vm67_vm1 = vcmask 254976  }
  0x28   :  { %1165 = vmatprep.subr.bf16.mxu0 %v1508_v0  ;;  %1169 = vmatprep.mubr.msk.bf16.mxu0 %vm1509_vm0, %v1508_v0  ;;  %v1573_v2 = vld [vmem:[#allocation9] sm:$0xff]   ;;  %v66_v3 = vld [vmem:[#allocation7] sm:$0x3]  ;;  %v69_v4 = vld [vmem:[%s1827_s2] sm:$0x3]  ;;  %vm92_vm2 = vcmask 261120  }
  0x29   :  { %1173 = vmatprep.subr.bf16.mxu1 %v1508_v0  ;;  %1177 = vmatprep.mubr.msk.bf16.mxu1 %vm1509_vm0, %v1508_v0  ;;  %68 = vst.msk [vmem:[#allocation2] sm:$0x3] %vm67_vm1, %v66_v3  ;;  %70 = vst.msk [vmem:[#allocation3] sm:$0x3] %vm67_vm1, %v69_v4  ;;  %s1510_s2 = smov 32   ;;  %vm218_vm3 = vcmask 1041409  }
  0x2a   :  { %1166 = vmatpush3.bf16.msra.mxu0 %v1570_v1  ;;  %1174 = vmatpush3.bf16.msra.mxu1 %v1570_v1  ;;  %v78_v9 = vld [vmem:[#allocation4 + $0x8] sm:$0x1]  ;;  %v77_v13 = vld [vmem:[#allocation4] sm:$0x1]  ;;  %v209_v54 = vld [vmem:[#allocation4 + $0x1] sm:$0x1] }
  0x2b   :  { %1167 = vmatprep.subr.bf16.mxu0 %v1508_v0  ;;  %1175 = vmatprep.subr.bf16.mxu1 %v1508_v0  ;;  %v210_v55 = vld [vmem:[#allocation4 + $0x9] sm:$0x1]  ;;  %vm206_vm4 = vcmask 253952   ;;  %s1511_s15 = smov 96   ;;  %s1512_s16 = smov [#allocation11]  }
  0x2c   :  { %s1088_s17 = sshll.u32 %s1512_s16, 4  ;;  %s1513_s18 = smov [#allocation13]   ;;  %s1089_s17 = int_to_ptr.vmem [resolvable:$true] %s1088_s17 }
  0x2d   :  { %s1098_s19 = sshll.u32 %s1513_s18, 4  ;;  %s1514_s20 = smov [#allocation10]   ;;  %s1099_s19 = int_to_ptr.vmem [resolvable:$true] %s1098_s19 }
  0x2e   :  { %1168 = vmatpush3.bf16.msra.mxu0 %v1573_v2  ;;  %1176 = vmatpush3.bf16.msra.mxu1 %v1573_v2  ;;  %s1075_s21 = sshll.u32 %s1514_s20, 4  ;;  %s1433_s22 = scalar_lea.vmem %s1089_s17, 32  ;;  %s1805_s21 = int_to_ptr.vmem [resolvable:$true] %s1075_s21 }
  0x2f   :  { %1181 = vmatprep.subr.bf16.mxu0 %v1508_v0  ;;  %1189 = vmatprep.subr.bf16.mxu1 %v1508_v0  ;;  %p1434_p1 = scmp.ne.s32.totalorder %s1089_s17, %s1433_s22  ;;  %p1438_p2 = scmp.lt.s32.totalorder %s1089_s17, %s1089_s17 }
  0x30   :  { %v71_v5 = vld [vmem:[#allocation2] sm:$0x3]  ;;  %v72_v6 = vld [vmem:[#allocation3] sm:$0x3]  ;;  %p1439_p3 = scmp.lt.s32.totalorder %s1433_s22, %s1433_s22 }
  0x31   :  { %v79_v7 = vpack.c.bf16 %v71_v5, %v71_v5  ;;  %v157_v8 = vrot.slane %v72_v6, 1 }
  0x32   :  { %p1440_p4 = por %p1439_p3, %p1438_p2 }
  0x33   :  { %1170 = vmatmul.mubr.msk.bf16.vlgmr.msra.gmra.mxu0 %vm92_vm2, %v79_v7  ;;  %160 = vrot.lane.b32.xlu1 %v157_v8, %s1510_s2 }
  0x34   :  { %1182 = vmatpush3.bf16.msra.mxu0 %v1570_v1  ;;  %1185 = vmatprep.mubr.msk.bf16.mxu0 %vm1509_vm0, %v1508_v0  ;;  %p1441_p5 = pnand %p1440_p4, %p1434_p1 }
  0x35   :  { %1183 = vmatprep.subr.bf16.mxu0 %v1508_v0 }
  0x37   :  { %158 = vrot.lane.b32.xlu1 %v72_v6, %s1510_s2 }
  0x38   :  { %1184 = vmatpush3.bf16.msra.mxu0 %v1573_v2 }
  0x39   :  { %1197 = vmatprep.subr.bf16.mxu0 %v1508_v0 }
  0xa5   :  { %v161_v32 = vpop.permute.xlu1 %160 }
  0xa9   :  { %v159_v34 = vpop.permute.xlu1 %158 }
  0xf3   :  { %v130_v10 = vpop.f32.mrf.mxu0 }
  0xf4   :  { %v137_v11 = vrot.slane %v130_v10, 1  ;;  %v140_v16 = vadd.f32 %v130_v10, %v77_v13 }
  0xf5   :  { %v1171_v12 = vpop.f32.mrf.mxu0 }
  0xf6   :  { %v141_v14 = vadd.f32 %v137_v11, %v78_v9  ;;  %v1118_v21 = vmul.f32 -1.442695, %v140_v16 }
  0xf7   :  { %v133_v15 = vpop.f32.mrf.mxu0 }
  0xf8   :  { %1245 = vtanh.f32 %v141_v14  ;;  %v1119_v20 = vmul.f32 -1.442695, %v141_v14 }
  0xf9   :  { %v1172_v17 = vpop.f32.mrf.mxu0  ;;  %1247 = vtanh.f32 %v140_v16 }
  0xfa   :  { %1249 = vpow2.f32 %v1119_v20 }
  0xfb   :  { %1251 = vpow2.f32 %v1118_v21 }
 0x105   :  { %v1246_v18 = vpop.eup %1245 }
 0x106   :  { %170 = vrot.lane.b32.xlu0 %v1246_v18, %s1510_s2  ;;  %v1248_v19 = vpop.eup %1247 }
 0x107   :  { %v1250_v22 = vpop.eup %1249 }
 0x108   :  { %v149_v23 = vadd.f32 1.0, %v1250_v22  ;;  %v1252_v24 = vpop.eup %1251 }
 0x109   :  { %v148_v25 = vadd.f32 1.0, %v1252_v24 }
 0x10a   :  { %168 = vrot.lane.b32.xlu0 %v1248_v19, %s1510_s2  ;;  %1253 = vrcp.f32 %v149_v23 }
 0x10b   :  { %1255 = vrcp.f32 %v148_v25 }
 0x117   :  { %v1254_v26 = vpop.eup %1253 }
 0x118   :  { %v1256_v29 = vpop.eup %1255  ;;  %v165_v33 = vmul.f32 %v1254_v26, %v161_v32 }
 0x119   :  { %v164_v37 = vmul.f32 %v1256_v29, %v159_v34 }
 0x178   :  { %v171_v27 = vpop.permute.xlu0 %170 }
 0x179   :  { %v175_v28 = vmul.f32 %v1254_v26, %v171_v27 }
 0x17b   :  { %180 = vrot.lane.b32.xlu0 %v175_v28, %s1510_s2 }
 0x17c   :  { %v169_v30 = vpop.permute.xlu0 %168 }
 0x17d   :  { %v174_v31 = vmul.f32 %v1256_v29, %v169_v30 }
 0x17f   :  { %178 = vrot.lane.b32.xlu1 %v174_v31, %s1510_s2 }
 0x1ed   :  { %v181_v35 = vpop.permute.xlu0 %180 }
 0x1ee   :  { %v1600_v36 = vadd.f32 %v181_v35, %v165_v33 }
 0x1f0   :  { %1257 = vtanh.f32 %v1600_v36 }
 0x1f1   :  { %v179_v38 = vpop.permute.xlu1 %178 }
 0x1f2   :  { %v184_v39 = vadd.f32 %v179_v38, %v164_v37  ;;  %v331_v37 = vld [vmem:[#allocation4 + $0xa] sm:$0x1] }
 0x1f4   :  { %1259 = vtanh.f32 %v184_v39 }
 0x1fd   :  { %v1258_v40 = vpop.eup %1257 }
 0x1fe   :  { %192 = vrot.lane.b32.xlu0 %v1258_v40, %s1510_s2 }
 0x201   :  { %v1260_v41 = vpop.eup %1259 }
 0x202   :  { %190 = vrot.lane.b32.xlu1 %v1260_v41, %s1510_s2 }
 0x270   :  { %v193_v42 = vpop.permute.xlu0 %192 }
 0x271   :  { %v1605_v43 = vmul.f32 %v1254_v26, %v193_v42 }
 0x273   :  { %v212_v44 = vpack.c.bf16 %v1605_v43, %v1605_v43 }
 0x274   :  { %v191_v45 = vpop.permute.xlu1 %190 }
 0x275   :  { %v216_v46 = vunpack.c.l.b16 %v212_v44  ;;  %v1609_v47 = vmul.f32 %v1256_v29, %v191_v45 }
 0x277   :  { %v211_v48 = vpack.c.bf16 %v1609_v47, %v1609_v47  ;;  %v217_v49 = vrot.slane %v216_v46, 7 }
 0x279   :  { %v215_v50 = vunpack.c.l.b16 %v211_v48 }
 0x27b   :  { %v219_v51 = vsel %vm218_vm3, %v217_v49, %v215_v50 }
 0x27c   :  { %v220_v52 = vpack.c.b16 %v219_v51, %v219_v51 }
 0x27e   :  { %221 = vrot.lane.b32.xlu0 %v220_v52, %s1506_s11 }
 0x2f0   :  { %v222_v53 = vpop.permute.xlu0 %221 }
 0x2f1   :  { %1178 = vmatmul.mubr.msk.bf16.vlgmr.msra.gmra.mxu1 %vm92_vm2, %v222_v53 }
 0x2f2   :  { %1190 = vmatpush3.bf16.msra.mxu1 %v1570_v1  ;;  %1193 = vmatprep.mubr.msk.bf16.mxu1 %vm1509_vm0, %v1508_v0 }
 0x2f3   :  { %1191 = vmatprep.subr.bf16.mxu1 %v1508_v0 }
 0x2f6   :  { %1192 = vmatpush3.bf16.msra.mxu1 %v1573_v2 }
 0x2f7   :  { %1205 = vmatprep.subr.bf16.mxu1 %v1508_v0 }
 0x3b1   :  { %v260_v56 = vpop.f32.mrf.mxu1 }
 0x3b2   :  { %v267_v57 = vrot.slane %v260_v56, 1  ;;  %v270_v58 = vadd.f32 %v260_v56, %v209_v54 }
 0x3b3   :  { %v1179_v59 = vpop.f32.mrf.mxu1 }
 0x3b4   :  { %v271_v60 = vadd.f32 %v267_v57, %v210_v55  ;;  %1261 = vtanh.f32 %v270_v58  ;;  %v1121_v4 = vmul.f32 -1.442695, %v270_v58 }
 0x3b5   :  { %v263_v61 = vpop.f32.mrf.mxu1 }
 0x3b6   :  { %1263 = vtanh.f32 %v271_v60  ;;  %v1122_v5 = vmul.f32 -1.442695, %v271_v60 }
 0x3b7   :  { %v1180_v62 = vpop.f32.mrf.mxu1  ;;  %1265 = vpow2.f32 %v1121_v4 }
 0x3b8   :  { %1267 = vpow2.f32 %v1122_v5 }
 0x3c1   :  { %v1262_v63 = vpop.eup %1261 }
 0x3c2   :  { %290 = vrot.lane.b32.xlu0 %v1262_v63, %s1510_s2 }
 0x3c3   :  { %v1264_v3 = vpop.eup %1263 }
 0x3c4   :  { %292 = vrot.lane.b32.xlu1 %v1264_v3, %s1510_s2  ;;  %v1266_v6 = vpop.eup %1265 }
 0x3c5   :  { %v1268_v7 = vpop.eup %1267  ;;  %v278_v8 = vadd.f32 1.0, %v1266_v6 }
 0x3c6   :  { %v279_v9 = vadd.f32 1.0, %v1268_v7 }
 0x3c7   :  { %1269 = vrcp.f32 %v278_v8 }
 0x3c8   :  { %1271 = vrcp.f32 %v279_v9 }
 0x3d4   :  { %v1270_v10 = vpop.eup %1269 }
 0x3d5   :  { %v1272_v13 = vpop.eup %1271  ;;  %v286_v16 = vmul.f32 %v1270_v10, %v184_v39 }
 0x3d6   :  { %v287_v19 = vmul.f32 %v1272_v13, %v1600_v36  ;;  %v330_v36 = vld [vmem:[#allocation4 + $0x2] sm:$0x1] }
 0x434   :  { %v291_v11 = vpop.permute.xlu0 %290 }
 0x435   :  { %v296_v12 = vmul.f32 %v1270_v10, %v291_v11 }
 0x436   :  { %v293_v14 = vpop.permute.xlu1 %292 }
 0x437   :  { %300 = vrot.lane.b32.xlu0 %v296_v12, %s1510_s2  ;;  %v297_v15 = vmul.f32 %v1272_v13, %v293_v14 }
 0x439   :  { %302 = vrot.lane.b32.xlu1 %v297_v15, %s1510_s2 }
 0x4a9   :  { %v301_v17 = vpop.permute.xlu0 %300 }
 0x4aa   :  { %v306_v18 = vadd.f32 %v301_v17, %v286_v16 }
 0x4ab   :  { %v303_v20 = vpop.permute.xlu1 %302 }
 0x4ac   :  { %1273 = vtanh.f32 %v306_v18  ;;  %v307_v21 = vadd.f32 %v303_v20, %v287_v19  ;;  %v450_v20 = vld [vmem:[#allocation4 + $0x3] sm:$0x1] }
 0x4ae   :  { %1275 = vtanh.f32 %v307_v21 }
 0x4b9   :  { %v1274_v22 = vpop.eup %1273 }
 0x4ba   :  { %312 = vrot.lane.b32.xlu0 %v1274_v22, %s1510_s2 }
 0x4bb   :  { %v1276_v23 = vpop.eup %1275 }
 0x4bc   :  { %314 = vrot.lane.b32.xlu1 %v1276_v23, %s1510_s2 }
 0x52c   :  { %v313_v24 = vpop.permute.xlu0 %312 }
 0x52d   :  { %v1629_v25 = vmul.f32 %v1270_v10, %v313_v24 }
 0x52e   :  { %v315_v26 = vpop.permute.xlu1 %314 }
 0x52f   :  { %v1631_v27 = vmul.f32 %v1272_v13, %v315_v26  ;;  %v332_v28 = vpack.c.bf16 %v1629_v25, %v1629_v25 }
 0x531   :  { %v333_v29 = vpack.c.bf16 %v1631_v27, %v1631_v27  ;;  %v336_v31 = vunpack.c.l.b16 %v332_v28 }
 0x533   :  { %v337_v30 = vunpack.c.l.b16 %v333_v29 }
 0x535   :  { %v338_v32 = vrot.slane %v337_v30, 7 }
 0x537   :  { %v339_v33 = vsel %vm218_vm3, %v338_v32, %v336_v31 }
 0x538   :  { %v340_v34 = vpack.c.b16 %v339_v33, %v339_v33 }
 0x53a   :  { %341 = vrot.lane.b32.xlu1 %v340_v34, %s1506_s11 }
 0x5ac   :  { %v342_v35 = vpop.permute.xlu1 %341 }
 0x5ad   :  { %1186 = vmatmul.mubr.msk.bf16.vlgmr.msra.gmra.mxu0 %vm92_vm2, %v342_v35 }
 0x5ae   :  { %1198 = vmatpush3.bf16.msra.mxu0 %v1570_v1  ;;  %1201 = vmatprep.mubr.msk.bf16.mxu0 %vm1509_vm0, %v1508_v0 }
 0x5af   :  { %1199 = vmatprep.subr.bf16.mxu0 %v1508_v0 }
 0x5b2   :  { %1200 = vmatpush3.bf16.msra.mxu0 %v1573_v2 }
 0x5b3   :  { %1213 = vmatprep.subr.bf16.mxu0 %v1508_v0 }
 0x66d   :  { %v380_v38 = vpop.f32.mrf.mxu0 }
 0x66e   :  { %v387_v39 = vrot.slane %v380_v38, 1  ;;  %v390_v40 = vadd.f32 %v380_v38, %v330_v36 }
 0x66f   :  { %v1187_v41 = vpop.f32.mrf.mxu0 }
 0x670   :  { %v391_v42 = vadd.f32 %v387_v39, %v331_v37  ;;  %1277 = vtanh.f32 %v390_v40  ;;  %v1124_v49 = vmul.f32 -1.442695, %v390_v40 }
 0x671   :  { %v383_v44 = vpop.f32.mrf.mxu0 }
 0x672   :  { %1279 = vtanh.f32 %v391_v42  ;;  %v1125_v50 = vmul.f32 -1.442695, %v391_v42 }
 0x673   :  { %v1188_v45 = vpop.f32.mrf.mxu0  ;;  %1281 = vpow2.f32 %v1124_v49 }
 0x674   :  { %1283 = vpow2.f32 %v1125_v50 }
 0x67d   :  { %v1278_v46 = vpop.eup %1277 }
 0x67e   :  { %410 = vrot.lane.b32.xlu1 %v1278_v46, %s1510_s2 }
 0x67f   :  { %v1280_v48 = vpop.eup %1279 }
 0x680   :  { %412 = vrot.lane.b32.xlu0 %v1280_v48, %s1510_s2  ;;  %v1282_v51 = vpop.eup %1281 }
 0x681   :  { %v1284_v52 = vpop.eup %1283  ;;  %v398_v53 = vadd.f32 1.0, %v1282_v51 }
 0x682   :  { %v399_v54 = vadd.f32 1.0, %v1284_v52 }
 0x683   :  { %1285 = vrcp.f32 %v398_v53 }
 0x684   :  { %1287 = vrcp.f32 %v399_v54 }
 0x690   :  { %v1286_v55 = vpop.eup %1285 }
 0x691   :  { %v1288_v58 = vpop.eup %1287  ;;  %v406_v61 = vmul.f32 %v1286_v55, %v306_v18 }
 0x692   :  { %v407_v3 = vmul.f32 %v1288_v58, %v307_v21  ;;  %v451_v21 = vld [vmem:[#allocation4 + $0xb] sm:$0x1] }
 0x6f0   :  { %v411_v56 = vpop.permute.xlu1 %410 }
 0x6f1   :  { %v416_v57 = vmul.f32 %v1286_v55, %v411_v56 }
 0x6f2   :  { %v413_v59 = vpop.permute.xlu0 %412 }
 0x6f3   :  { %420 = vrot.lane.b32.xlu1 %v416_v57, %s1510_s2  ;;  %v417_v60 = vmul.f32 %v1288_v58, %v413_v59 }
 0x6f5   :  { %422 = vrot.lane.b32.xlu0 %v417_v60, %s1510_s2 }
 0x765   :  { %v421_v62 = vpop.permute.xlu1 %420 }
 0x766   :  { %v426_v63 = vadd.f32 %v421_v62, %v406_v61 }
 0x767   :  { %v423_v4 = vpop.permute.xlu0 %422 }
 0x768   :  { %1289 = vtanh.f32 %v426_v63  ;;  %v427_v5 = vadd.f32 %v423_v4, %v407_v3 }
 0x76a   :  { %1291 = vtanh.f32 %v427_v5 }
 0x775   :  { %v1290_v6 = vpop.eup %1289 }
 0x776   :  { %432 = vrot.lane.b32.xlu1 %v1290_v6, %s1510_s2  ;;  %v570_v6 = vld [vmem:[#allocation4 + $0x4] sm:$0x1] }
 0x777   :  { %v1292_v7 = vpop.eup %1291 }
 0x778   :  { %434 = vrot.lane.b32.xlu0 %v1292_v7, %s1510_s2  ;;  %v571_v7 = vld [vmem:[#allocation4 + $0xc] sm:$0x1] }
 0x7e8   :  { %v433_v8 = vpop.permute.xlu1 %432 }
 0x7e9   :  { %v1652_v9 = vmul.f32 %v1286_v55, %v433_v8 }
 0x7ea   :  { %v435_v10 = vpop.permute.xlu0 %434 }
 0x7eb   :  { %v1654_v11 = vmul.f32 %v1288_v58, %v435_v10  ;;  %v452_v12 = vpack.c.bf16 %v1652_v9, %v1652_v9 }
 0x7ed   :  { %v453_v13 = vpack.c.bf16 %v1654_v11, %v1654_v11  ;;  %v456_v15 = vunpack.c.l.b16 %v452_v12 }
 0x7ef   :  { %v457_v14 = vunpack.c.l.b16 %v453_v13 }
 0x7f1   :  { %v458_v16 = vrot.slane %v457_v14, 7 }
 0x7f3   :  { %v459_v17 = vsel %vm218_vm3, %v458_v16, %v456_v15 }
 0x7f4   :  { %v460_v18 = vpack.c.b16 %v459_v17, %v459_v17 }
 0x7f6   :  { %461 = vrot.lane.b32.xlu0 %v460_v18, %s1506_s11 }
 0x868   :  { %v462_v19 = vpop.permute.xlu0 %461 }
 0x869   :  { %1194 = vmatmul.mubr.msk.bf16.vlgmr.msra.gmra.mxu1 %vm92_vm2, %v462_v19 }
 0x86a   :  { %1206 = vmatpush3.bf16.msra.mxu1 %v1570_v1  ;;  %1209 = vmatprep.mubr.msk.bf16.mxu1 %vm1509_vm0, %v1508_v0 }
 0x86b   :  { %1207 = vmatprep.subr.bf16.mxu1 %v1508_v0 }
 0x86e   :  { %1208 = vmatpush3.bf16.msra.mxu1 %v1573_v2 }
 0x86f   :  { %1221 = vmatprep.subr.bf16.mxu1 %v1508_v0 }
 0x929   :  { %v500_v22 = vpop.f32.mrf.mxu1 }
 0x92a   :  { %v507_v23 = vrot.slane %v500_v22, 1  ;;  %v510_v24 = vadd.f32 %v500_v22, %v450_v20 }
 0x92b   :  { %v1195_v26 = vpop.f32.mrf.mxu1 }
 0x92c   :  { %v511_v28 = vadd.f32 %v507_v23, %v451_v21  ;;  %1293 = vtanh.f32 %v510_v24  ;;  %v1127_v33 = vmul.f32 -1.442695, %v510_v24 }
 0x92d   :  { %v503_v29 = vpop.f32.mrf.mxu1 }
 0x92e   :  { %1295 = vtanh.f32 %v511_v28  ;;  %v1128_v34 = vmul.f32 -1.442695, %v511_v28 }
 0x92f   :  { %v1196_v30 = vpop.f32.mrf.mxu1  ;;  %1297 = vpow2.f32 %v1127_v33 }
 0x930   :  { %1299 = vpow2.f32 %v1128_v34 }
 0x939   :  { %v1294_v31 = vpop.eup %1293 }
 0x93a   :  { %530 = vrot.lane.b32.xlu0 %v1294_v31, %s1510_s2 }
 0x93b   :  { %v1296_v32 = vpop.eup %1295 }
 0x93c   :  { %532 = vrot.lane.b32.xlu1 %v1296_v32, %s1510_s2  ;;  %v1298_v35 = vpop.eup %1297 }
 0x93d   :  { %v1300_v36 = vpop.eup %1299  ;;  %v518_v37 = vadd.f32 1.0, %v1298_v35 }
 0x93e   :  { %v519_v38 = vadd.f32 1.0, %v1300_v36 }
 0x93f   :  { %1301 = vrcp.f32 %v518_v37 }
 0x940   :  { %1303 = vrcp.f32 %v519_v38 }
 0x94c   :  { %v1302_v39 = vpop.eup %1301 }
 0x94d   :  { %v1304_v42 = vpop.eup %1303  ;;  %v526_v46 = vmul.f32 %v1302_v39, %v426_v63 }
 0x94e   :  { %v527_v50 = vmul.f32 %v1304_v42, %v427_v5 }
 0x9ac   :  { %v531_v40 = vpop.permute.xlu0 %530 }
 0x9ad   :  { %v536_v41 = vmul.f32 %v1302_v39, %v531_v40 }
 0x9ae   :  { %v533_v44 = vpop.permute.xlu1 %532 }
 0x9af   :  { %540 = vrot.lane.b32.xlu0 %v536_v41, %s1510_s2  ;;  %v537_v45 = vmul.f32 %v1304_v42, %v533_v44 }
 0x9b1   :  { %542 = vrot.lane.b32.xlu1 %v537_v45, %s1510_s2 }
 0xa21   :  { %v541_v48 = vpop.permute.xlu0 %540 }
 0xa22   :  { %v546_v49 = vadd.f32 %v541_v48, %v526_v46 }
 0xa23   :  { %v543_v51 = vpop.permute.xlu1 %542 }
 0xa24   :  { %1305 = vtanh.f32 %v546_v49  ;;  %v547_v52 = vadd.f32 %v543_v51, %v527_v50 }
 0xa26   :  { %1307 = vtanh.f32 %v547_v52 }
 0xa31   :  { %v1306_v53 = vpop.eup %1305 }
 0xa32   :  { %552 = vrot.lane.b32.xlu0 %v1306_v53, %s1510_s2 }
 0xa33   :  { %v1308_v54 = vpop.eup %1307 }
 0xa34   :  { %554 = vrot.lane.b32.xlu1 %v1308_v54, %s1510_s2 }
 0xaa4   :  { %v553_v55 = vpop.permute.xlu0 %552 }
 0xaa5   :  { %v1675_v56 = vmul.f32 %v1302_v39, %v553_v55  ;;  %v690_v55 = vld [vmem:[#allocation4 + $0x5] sm:$0x1] }
 0xaa6   :  { %v555_v57 = vpop.permute.xlu1 %554 }
 0xaa7   :  { %v1677_v58 = vmul.f32 %v1304_v42, %v555_v57  ;;  %v572_v59 = vpack.c.bf16 %v1675_v56, %v1675_v56  ;;  %v691_v57 = vld [vmem:[#allocation4 + $0xd] sm:$0x1] }
 0xaa9   :  { %v573_v60 = vpack.c.bf16 %v1677_v58, %v1677_v58  ;;  %v576_v62 = vunpack.c.l.b16 %v572_v59 }
 0xaab   :  { %v577_v61 = vunpack.c.l.b16 %v573_v60 }
 0xaad   :  { %v578_v63 = vrot.slane %v577_v61, 7 }
 0xaaf   :  { %v579_v3 = vsel %vm218_vm3, %v578_v63, %v576_v62 }
 0xab0   :  { %v580_v4 = vpack.c.b16 %v579_v3, %v579_v3 }
 0xab2   :  { %581 = vrot.lane.b32.xlu1 %v580_v4, %s1506_s11 }
 0xb24   :  { %v582_v5 = vpop.permute.xlu1 %581 }
 0xb25   :  { %1202 = vmatmul.mubr.msk.bf16.vlgmr.msra.gmra.mxu0 %vm92_vm2, %v582_v5 }
 0xb26   :  { %1214 = vmatpush3.bf16.msra.mxu0 %v1570_v1  ;;  %1217 = vmatprep.mubr.msk.bf16.mxu0 %vm1509_vm0, %v1508_v0 }
 0xb27   :  { %1215 = vmatprep.subr.bf16.mxu0 %v1508_v0 }
 0xb2a   :  { %1216 = vmatpush3.bf16.msra.mxu0 %v1573_v2 }
 0xbe5   :  { %v620_v8 = vpop.f32.mrf.mxu0 }
 0xbe6   :  { %v627_v10 = vrot.slane %v620_v8, 1  ;;  %v630_v12 = vadd.f32 %v620_v8, %v570_v6 }
 0xbe7   :  { %v1203_v13 = vpop.f32.mrf.mxu0 }
 0xbe8   :  { %v631_v14 = vadd.f32 %v627_v10, %v571_v7  ;;  %1309 = vtanh.f32 %v630_v12  ;;  %v1130_v19 = vmul.f32 -1.442695, %v630_v12 }
 0xbe9   :  { %v623_v15 = vpop.f32.mrf.mxu0 }
 0xbea   :  { %1311 = vtanh.f32 %v631_v14  ;;  %v1131_v20 = vmul.f32 -1.442695, %v631_v14 }
 0xbeb   :  { %v1204_v16 = vpop.f32.mrf.mxu0  ;;  %1313 = vpow2.f32 %v1130_v19 }
 0xbec   :  { %1315 = vpow2.f32 %v1131_v20 }
 0xbf5   :  { %v1310_v17 = vpop.eup %1309 }
 0xbf6   :  { %650 = vrot.lane.b32.xlu1 %v1310_v17, %s1510_s2 }
 0xbf7   :  { %v1312_v18 = vpop.eup %1311 }
 0xbf8   :  { %652 = vrot.lane.b32.xlu0 %v1312_v18, %s1510_s2  ;;  %v1314_v21 = vpop.eup %1313 }
 0xbf9   :  { %v1316_v22 = vpop.eup %1315  ;;  %v638_v23 = vadd.f32 1.0, %v1314_v21 }
 0xbfa   :  { %v639_v24 = vadd.f32 1.0, %v1316_v22 }
 0xbfb   :  { %1317 = vrcp.f32 %v638_v23 }
 0xbfc   :  { %1319 = vrcp.f32 %v639_v24 }
 0xc08   :  { %v1318_v26 = vpop.eup %1317 }
 0xc09   :  { %v1320_v30 = vpop.eup %1319  ;;  %v646_v33 = vmul.f32 %v1318_v26, %v546_v49 }
 0xc0a   :  { %v647_v36 = vmul.f32 %v1320_v30, %v547_v52 }
 0xc68   :  { %v651_v28 = vpop.permute.xlu1 %650 }
 0xc69   :  { %v656_v29 = vmul.f32 %v1318_v26, %v651_v28 }
 0xc6a   :  { %v653_v31 = vpop.permute.xlu0 %652 }
 0xc6b   :  { %660 = vrot.lane.b32.xlu1 %v656_v29, %s1510_s2  ;;  %v657_v32 = vmul.f32 %v1320_v30, %v653_v31 }
 0xc6d   :  { %662 = vrot.lane.b32.xlu0 %v657_v32, %s1510_s2 }
 0xcdd   :  { %v661_v34 = vpop.permute.xlu1 %660 }
 0xcde   :  { %v666_v35 = vadd.f32 %v661_v34, %v646_v33 }
 0xcdf   :  { %v663_v37 = vpop.permute.xlu0 %662 }
 0xce0   :  { %1321 = vtanh.f32 %v666_v35  ;;  %v667_v38 = vadd.f32 %v663_v37, %v647_v36 }
 0xce2   :  { %1323 = vtanh.f32 %v667_v38 }
 0xced   :  { %v1322_v39 = vpop.eup %1321 }
 0xcee   :  { %672 = vrot.lane.b32.xlu1 %v1322_v39, %s1510_s2 }
 0xcef   :  { %v1324_v40 = vpop.eup %1323 }
 0xcf0   :  { %674 = vrot.lane.b32.xlu0 %v1324_v40, %s1510_s2  ;;  %v810_v40 = vld [vmem:[#allocation4 + $0x6] sm:$0x1] }
 0xd60   :  { %v673_v41 = vpop.permute.xlu1 %672 }
 0xd61   :  { %v1697_v42 = vmul.f32 %v1318_v26, %v673_v41  ;;  %v811_v41 = vld [vmem:[#allocation4 + $0xe] sm:$0x1] }
 0xd62   :  { %v675_v44 = vpop.permute.xlu0 %674 }
 0xd63   :  { %v1699_v45 = vmul.f32 %v1320_v30, %v675_v44  ;;  %v692_v46 = vpack.c.bf16 %v1697_v42, %v1697_v42 }
 0xd65   :  { %v693_v48 = vpack.c.bf16 %v1699_v45, %v1699_v45  ;;  %v696_v50 = vunpack.c.l.b16 %v692_v46 }
 0xd67   :  { %v697_v49 = vunpack.c.l.b16 %v693_v48 }
 0xd69   :  { %v698_v51 = vrot.slane %v697_v49, 7 }
 0xd6b   :  { %v699_v52 = vsel %vm218_vm3, %v698_v51, %v696_v50 }
 0xd6c   :  { %v700_v53 = vpack.c.b16 %v699_v52, %v699_v52 }
 0xd6e   :  { %701 = vrot.lane.b32.xlu0 %v700_v53, %s1506_s11 }
 0xde0   :  { %v702_v54 = vpop.permute.xlu0 %701 }
 0xde1   :  { %1210 = vmatmul.mubr.msk.bf16.vlgmr.msra.gmra.mxu1 %vm92_vm2, %v702_v54 }
 0xde2   :  { %1222 = vmatpush3.bf16.msra.mxu1 %v1570_v1  ;;  %1225 = vmatprep.mubr.msk.bf16.mxu1 %vm1509_vm0, %v1508_v0 }
 0xde3   :  { %1223 = vmatprep.subr.bf16.mxu1 %v1508_v0 }
 0xde6   :  { %1224 = vmatpush3.bf16.msra.mxu1 %v1573_v2 }
 0xea1   :  { %v740_v59 = vpop.f32.mrf.mxu1 }
 0xea2   :  { %v747_v60 = vrot.slane %v740_v59, 1  ;;  %v750_v61 = vadd.f32 %v740_v59, %v690_v55 }
 0xea3   :  { %v1211_v62 = vpop.f32.mrf.mxu1 }
 0xea4   :  { %v751_v63 = vadd.f32 %v747_v60, %v691_v57  ;;  %1325 = vtanh.f32 %v750_v61  ;;  %v1133_v0 = vmul.f32 -1.442695, %v750_v61 }
 0xea5   :  { %v743_v3 = vpop.f32.mrf.mxu1 }
 0xea6   :  { %1327 = vtanh.f32 %v751_v63  ;;  %v1134_v6 = vmul.f32 -1.442695, %v751_v63 }
 0xea7   :  { %v1212_v4 = vpop.f32.mrf.mxu1  ;;  %1329 = vpow2.f32 %v1133_v0 }
 0xea8   :  { %1331 = vpow2.f32 %v1134_v6 }
 0xeb1   :  { %v1326_v5 = vpop.eup %1325 }
 0xeb2   :  { %770 = vrot.lane.b32.xlu0 %v1326_v5, %s1510_s2 }
 0xeb3   :  { %v1328_v1 = vpop.eup %1327 }
 0xeb4   :  { %772 = vrot.lane.b32.xlu1 %v1328_v1, %s1510_s2  ;;  %v1330_v2 = vpop.eup %1329 }
 0xeb5   :  { %v1332_v7 = vpop.eup %1331  ;;  %v758_v8 = vadd.f32 1.0, %v1330_v2 }
 0xeb6   :  { %v759_v10 = vadd.f32 1.0, %v1332_v7 }
 0xeb7   :  { %1333 = vrcp.f32 %v758_v8 }
 0xeb8   :  { %1335 = vrcp.f32 %v759_v10 }
 0xec4   :  { %v1334_v12 = vpop.eup %1333 }
 0xec5   :  { %v1336_v15 = vpop.eup %1335  ;;  %v766_v18 = vmul.f32 %v1334_v12, %v666_v35 }
 0xec6   :  { %v767_v21 = vmul.f32 %v1336_v15, %v667_v38 }
 0xf24   :  { %v771_v13 = vpop.permute.xlu0 %770 }
 0xf25   :  { %v776_v14 = vmul.f32 %v1334_v12, %v771_v13 }
 0xf26   :  { %v773_v16 = vpop.permute.xlu1 %772 }
 0xf27   :  { %780 = vrot.lane.b32.xlu0 %v776_v14, %s1510_s2  ;;  %v777_v17 = vmul.f32 %v1336_v15, %v773_v16 }
 0xf29   :  { %782 = vrot.lane.b32.xlu1 %v777_v17, %s1510_s2 }
 0xf99   :  { %v781_v19 = vpop.permute.xlu0 %780 }
 0xf9a   :  { %v786_v20 = vadd.f32 %v781_v19, %v766_v18 }
 0xf9b   :  { %v783_v22 = vpop.permute.xlu1 %782 }
 0xf9c   :  { %1337 = vtanh.f32 %v786_v20  ;;  %v787_v23 = vadd.f32 %v783_v22, %v767_v21 }
 0xf9e   :  { %1339 = vtanh.f32 %v787_v23 }
 0xfa9   :  { %v1338_v24 = vpop.eup %1337 }
 0xfaa   :  { %792 = vrot.lane.b32.xlu0 %v1338_v24, %s1510_s2 }
 0xfab   :  { %v1340_v26 = vpop.eup %1339 }
 0xfac   :  { %794 = vrot.lane.b32.xlu1 %v1340_v26, %s1510_s2 }
0x101c   :  { %v793_v28 = vpop.permute.xlu0 %792 }
0x101d   :  { %v1719_v29 = vmul.f32 %v1334_v12, %v793_v28 }
0x101e   :  { %v795_v30 = vpop.permute.xlu1 %794 }
0x101f   :  { %v1721_v31 = vmul.f32 %v1336_v15, %v795_v30  ;;  %v812_v32 = vpack.c.bf16 %v1719_v29, %v1719_v29  ;;  %v930_v30 = vld [vmem:[#allocation4 + $0x7] sm:$0x1] }
0x1021   :  { %v813_v33 = vpack.c.bf16 %v1721_v31, %v1721_v31  ;;  %v816_v35 = vunpack.c.l.b16 %v812_v32  ;;  %v931_v32 = vld [vmem:[#allocation4 + $0xf] sm:$0x1] }
0x1023   :  { %v817_v34 = vunpack.c.l.b16 %v813_v33 }
0x1025   :  { %v818_v36 = vrot.slane %v817_v34, 7 }
0x1027   :  { %v819_v37 = vsel %vm218_vm3, %v818_v36, %v816_v35 }
0x1028   :  { %v820_v38 = vpack.c.b16 %v819_v37, %v819_v37 }
0x102a   :  { %821 = vrot.lane.b32.xlu1 %v820_v38, %s1506_s11 }
0x109c   :  { %v822_v39 = vpop.permute.xlu1 %821 }
0x109d   :  { %1218 = vmatmul.mubr.msk.bf16.vlgmr.msra.gmra.mxu0 %vm92_vm2, %v822_v39 }
0x115d   :  { %v860_v44 = vpop.f32.mrf.mxu0 }
0x115e   :  { %v867_v46 = vrot.slane %v860_v44, 1  ;;  %v870_v48 = vadd.f32 %v860_v44, %v810_v40 }
0x115f   :  { %v1219_v49 = vpop.f32.mrf.mxu0 }
0x1160   :  { %v871_v50 = vadd.f32 %v867_v46, %v811_v41  ;;  %1341 = vtanh.f32 %v870_v48  ;;  %v1136_v55 = vmul.f32 -1.442695, %v870_v48 }
0x1161   :  { %v863_v51 = vpop.f32.mrf.mxu0 }
0x1162   :  { %1343 = vtanh.f32 %v871_v50  ;;  %v1137_v57 = vmul.f32 -1.442695, %v871_v50 }
0x1163   :  { %v1220_v52 = vpop.f32.mrf.mxu0  ;;  %1345 = vpow2.f32 %v1136_v55 }
0x1164   :  { %1347 = vpow2.f32 %v1137_v57 }
0x116d   :  { %v1342_v53 = vpop.eup %1341 }
0x116e   :  { %890 = vrot.lane.b32.xlu1 %v1342_v53, %s1510_s2 }
0x116f   :  { %v1344_v54 = vpop.eup %1343 }
0x1170   :  { %892 = vrot.lane.b32.xlu0 %v1344_v54, %s1510_s2  ;;  %v1346_v59 = vpop.eup %1345 }
0x1171   :  { %v1348_v60 = vpop.eup %1347  ;;  %v878_v61 = vadd.f32 1.0, %v1346_v59 }
0x1172   :  { %v879_v62 = vadd.f32 1.0, %v1348_v60 }
0x1173   :  { %1349 = vrcp.f32 %v878_v61 }
0x1174   :  { %1351 = vrcp.f32 %v879_v62 }
0x1180   :  { %v1350_v63 = vpop.eup %1349 }
0x1181   :  { %v1352_v5 = vpop.eup %1351  ;;  %v886_v6 = vmul.f32 %v1350_v63, %v786_v20 }
0x1182   :  { %v887_v8 = vmul.f32 %v1352_v5, %v787_v23 }
0x11e0   :  { %v891_v3 = vpop.permute.xlu1 %890 }
0x11e1   :  { %v896_v4 = vmul.f32 %v1350_v63, %v891_v3 }
0x11e2   :  { %v893_v1 = vpop.permute.xlu0 %892 }
0x11e3   :  { %900 = vrot.lane.b32.xlu1 %v896_v4, %s1510_s2  ;;  %v897_v0 = vmul.f32 %v1352_v5, %v893_v1 }
0x11e5   :  { %902 = vrot.lane.b32.xlu0 %v897_v0, %s1510_s2 }
0x1255   :  { %v901_v2 = vpop.permute.xlu1 %900 }
0x1256   :  { %v906_v7 = vadd.f32 %v901_v2, %v886_v6 }
0x1257   :  { %v903_v10 = vpop.permute.xlu0 %902 }
0x1258   :  { %1353 = vtanh.f32 %v906_v7  ;;  %v907_v12 = vadd.f32 %v903_v10, %v887_v8 }
0x125a   :  { %1355 = vtanh.f32 %v907_v12 }
0x1265   :  { %v1354_v13 = vpop.eup %1353 }
0x1266   :  { %912 = vrot.lane.b32.xlu1 %v1354_v13, %s1510_s2 }
0x1267   :  { %v1356_v14 = vpop.eup %1355 }
0x1268   :  { %914 = vrot.lane.b32.xlu0 %v1356_v14, %s1510_s2 }
0x12d8   :  { %v913_v15 = vpop.permute.xlu1 %912 }
0x12d9   :  { %v1736_v16 = vmul.f32 %v1350_v63, %v913_v15 }
0x12da   :  { %v915_v17 = vpop.permute.xlu0 %914 }
0x12db   :  { %v1738_v18 = vmul.f32 %v1352_v5, %v915_v17  ;;  %v932_v19 = vpack.c.bf16 %v1736_v16, %v1736_v16 }
0x12dd   :  { %v933_v20 = vpack.c.bf16 %v1738_v18, %v1738_v18  ;;  %v936_v22 = vunpack.c.l.b16 %v932_v19 }
0x12df   :  { %v937_v21 = vunpack.c.l.b16 %v933_v20 }
0x12e1   :  { %v938_v23 = vrot.slane %v937_v21, 7 }
0x12e3   :  { %v939_v24 = vsel %vm218_vm3, %v938_v23, %v936_v22 }
0x12e4   :  { %v940_v26 = vpack.c.b16 %v939_v24, %v939_v24 }
0x12e6   :  { %941 = vrot.lane.b32.xlu0 %v940_v26, %s1506_s11 }
0x1358   :  { %v942_v28 = vpop.permute.xlu0 %941 }
0x1359   :  { %1226 = vmatmul.mubr.msk.bf16.vlgmr.msra.gmra.mxu1 %vm92_vm2, %v942_v28 }
0x1419   :  { %v980_v33 = vpop.f32.mrf.mxu1 }
0x141a   :  { %v987_v34 = vrot.slane %v980_v33, 1  ;;  %v990_v35 = vadd.f32 %v980_v33, %v930_v30 }
0x141b   :  { %v1227_v36 = vpop.f32.mrf.mxu1 }
0x141c   :  { %v991_v37 = vadd.f32 %v987_v34, %v931_v32  ;;  %1357 = vtanh.f32 %v990_v35  ;;  %v1139_v44 = vmul.f32 -1.442695, %v990_v35 }
0x141d   :  { %v983_v38 = vpop.f32.mrf.mxu1 }
0x141e   :  { %1359 = vtanh.f32 %v991_v37  ;;  %v1140_v46 = vmul.f32 -1.442695, %v991_v37 }
0x141f   :  { %v1228_v39 = vpop.f32.mrf.mxu1  ;;  %1361 = vpow2.f32 %v1139_v44 }
0x1420   :  { %1363 = vpow2.f32 %v1140_v46 }
0x1429   :  { %v1358_v40 = vpop.eup %1357 }
0x142a   :  { %1010 = vrot.lane.b32.xlu0 %v1358_v40, %s1510_s2 }
0x142b   :  { %v1360_v41 = vpop.eup %1359 }
0x142c   :  { %1012 = vrot.lane.b32.xlu1 %v1360_v41, %s1510_s2  ;;  %v1362_v48 = vpop.eup %1361 }
0x142d   :  { %v1364_v49 = vpop.eup %1363  ;;  %v998_v50 = vadd.f32 1.0, %v1362_v48 }
0x142e   :  { %v999_v51 = vadd.f32 1.0, %v1364_v49 }
0x142f   :  { %1365 = vrcp.f32 %v998_v50 }
0x1430   :  { %1367 = vrcp.f32 %v999_v51 }
0x143c   :  { %v1366_v52 = vpop.eup %1365 }
0x143d   :  { %v1368_v55 = vpop.eup %1367  ;;  %v1006_v60 = vmul.f32 %v1366_v52, %v906_v7 }
0x143e   :  { %v1007_v63 = vmul.f32 %v1368_v55, %v907_v12 }
0x149c   :  { %v1011_v53 = vpop.permute.xlu0 %1010 }
0x149d   :  { %v1016_v54 = vmul.f32 %v1366_v52, %v1011_v53 }
0x149e   :  { %v1013_v57 = vpop.permute.xlu1 %1012 }
0x149f   :  { %1020 = vrot.lane.b32.xlu0 %v1016_v54, %s1510_s2  ;;  %v1017_v59 = vmul.f32 %v1368_v55, %v1013_v57 }
0x14a1   :  { %1022 = vrot.lane.b32.xlu1 %v1017_v59, %s1510_s2 }
0x1511   :  { %v1021_v61 = vpop.permute.xlu0 %1020 }
0x1512   :  { %v1026_v62 = vadd.f32 %v1021_v61, %v1006_v60 }
0x1513   :  { %v1023_v3 = vpop.permute.xlu1 %1022 }
0x1514   :  { %1369 = vtanh.f32 %v1026_v62  ;;  %v1027_v4 = vadd.f32 %v1023_v3, %v1007_v63 }
0x1516   :  { %1371 = vtanh.f32 %v1027_v4  ;;  %v1059_v5 = vrot.slane %v1027_v4, 7 }
0x1518   :  { %v1060_v1 = vsel %vm218_vm3, %v1059_v5, %v1026_v62 }
0x1521   :  { %v1370_v0 = vpop.eup %1369 }
0x1522   :  { %1032 = vrot.lane.b32.xlu0 %v1370_v0, %s1510_s2 }
0x1523   :  { %v1372_v6 = vpop.eup %1371 }
0x1524   :  { %1034 = vrot.lane.b32.xlu1 %v1372_v6, %s1510_s2 }
0x1526   :  { %200 = vrot.lane.b32.xlu0 %v1609_v47, %s1506_s11 }
0x1528   :  { %202 = vrot.lane.b32.xlu1 %v1605_v43, %s1506_s11 }
0x152a   :  { %322 = vrot.lane.b32.xlu0 %v1629_v25, %s1506_s11 }
0x152c   :  { %324 = vrot.lane.b32.xlu1 %v1631_v27, %s1506_s11 }
0x152e   :  { %442 = vrot.lane.b32.xlu0 %v1652_v9, %s1506_s11 }
0x1530   :  { %444 = vrot.lane.b32.xlu1 %v1654_v11, %s1506_s11 }
0x1532   :  { %562 = vrot.lane.b32.xlu0 %v1675_v56, %s1506_s11 }
0x1534   :  { %564 = vrot.lane.b32.xlu1 %v1677_v58, %s1506_s11 }
0x1536   :  { %682 = vrot.lane.b32.xlu0 %v1697_v42, %s1506_s11 }
0x1538   :  { %684 = vrot.lane.b32.xlu1 %v1699_v45, %s1506_s11 }
0x153a   :  { %802 = vrot.lane.b32.xlu0 %v1719_v29, %s1506_s11 }
0x153c   :  { %804 = vrot.lane.b32.xlu1 %v1721_v31, %s1506_s11 }
0x153e   :  { %922 = vrot.lane.b32.xlu0 %v1736_v16, %s1506_s11 }
0x1540   :  { %924 = vrot.lane.b32.xlu1 %v1738_v18, %s1506_s11 }
0x1594   :  { %v1033_v43 = vpop.permute.xlu0 %1032 }
0x1595   :  { %v1038_v47 = vmul.f32 %v1366_v52, %v1033_v43 }
0x1596   :  { %v1035_v25 = vpop.permute.xlu1 %1034 }
0x1597   :  { %1042 = vrot.lane.b32.xlu0 %v1038_v47, %s1506_s11  ;;  %v1039_v27 = vmul.f32 %v1368_v55, %v1035_v25 }
0x1598   :  { %v201_v9 = vpop.permute.xlu0 %200 }
0x1599   :  { %207 = vst.msk [vmem:[#allocation10] sm:$0x1] %vm206_vm4, %v201_v9  ;;  %v1050_v11 = vrot.slane %v1039_v27, 7 }
0x159a   :  { %v203_v56 = vpop.permute.xlu1 %202 }
0x159b   :  { %1061 = vrot.lane.b32.xlu0 %v1060_v1, %s1511_s15  ;;  %208 = vst.msk [vmem:[#allocation10 + $0x8] sm:$0x1] %vm206_vm4, %v203_v56  ;;  %v1051_v42 = vsel %vm218_vm3, %v1050_v11, %v1038_v47 }
0x159c   :  { %v323_v58 = vpop.permute.xlu0 %322  ;;  %1052 = vrot.lane.b32.xlu1 %v1051_v42, %s1506_s11 }
0x159d   :  { %328 = vst.msk [vmem:[#allocation10 + $0x1] sm:$0x1] %vm206_vm4, %v323_v58 }
0x159e   :  { %v325_v45 = vpop.permute.xlu1 %324 }
0x159f   :  { %329 = vst.msk [vmem:[#allocation10 + $0x9] sm:$0x1] %vm206_vm4, %v325_v45 }
0x15a0   :  { %v443_v29 = vpop.permute.xlu0 %442  ;;  %1044 = vrot.lane.b32.xlu1 %v1039_v27, %s1506_s11 }
0x15a1   :  { %448 = vst.msk [vmem:[#allocation10 + $0x2] sm:$0x1] %vm206_vm4, %v443_v29 }
0x15a2   :  { %v445_v31 = vpop.permute.xlu1 %444 }
0x15a3   :  { %449 = vst.msk [vmem:[#allocation10 + $0xa] sm:$0x1] %vm206_vm4, %v445_v31 }
0x15a4   :  { %v563_v2 = vpop.permute.xlu0 %562 }
0x15a5   :  { %568 = vst.msk [vmem:[#allocation10 + $0x3] sm:$0x1] %vm206_vm4, %v563_v2 }
0x15a6   :  { %v565_v7 = vpop.permute.xlu1 %564 }
0x15a7   :  { %569 = vst.msk [vmem:[#allocation10 + $0xb] sm:$0x1] %vm206_vm4, %v565_v7 }
0x15a8   :  { %v683_v8 = vpop.permute.xlu0 %682 }
0x15a9   :  { %688 = vst.msk [vmem:[#allocation10 + $0x4] sm:$0x1] %vm206_vm4, %v683_v8 }
0x15aa   :  { %v685_v10 = vpop.permute.xlu1 %684 }
0x15ab   :  { %689 = vst.msk [vmem:[#allocation10 + $0xc] sm:$0x1] %vm206_vm4, %v685_v10 }
0x15ac   :  { %v803_v12 = vpop.permute.xlu0 %802 }
0x15ad   :  { %808 = vst.msk [vmem:[#allocation10 + $0x5] sm:$0x1] %vm206_vm4, %v803_v12 }
0x15ae   :  { %v805_v13 = vpop.permute.xlu1 %804 }
0x15af   :  { %809 = vst.msk [vmem:[#allocation10 + $0xd] sm:$0x1] %vm206_vm4, %v805_v13 }
0x15b0   :  { %v923_v14 = vpop.permute.xlu0 %922 }
0x15b1   :  { %928 = vst.msk [vmem:[#allocation10 + $0x6] sm:$0x1] %vm206_vm4, %v923_v14 }
0x15b2   :  { %v925_v15 = vpop.permute.xlu1 %924 }
0x15b3   :  { %929 = vst.msk [vmem:[#allocation10 + $0xe] sm:$0x1] %vm206_vm4, %v925_v15 }
0x1609   :  { %v1043_v16 = vpop.permute.xlu0 %1042 }
0x160a   :  { %1048 = vst.msk [vmem:[#allocation10 + $0x7] sm:$0x1] %vm206_vm4, %v1043_v16 }
0x160d   :  { %v1062_v17 = vpop.permute.xlu0 %1061 }
0x160e   :  { %1064 = vst.msk [vmem:[#allocation3] sm:$0x3] %vm67_vm1, %v1062_v17  ;;  %1069 = vst.msk [vmem:[#allocation13] sm:$0x3] %vm67_vm1, %v1062_v17  ;;  %v1053_v18 = vpop.permute.xlu1 %1052 }
0x160f   :  { %1056 = vst.msk [vmem:[#allocation2] sm:$0x3] %vm67_vm1, %v1053_v18  ;;  %1068 = vst.msk [vmem:[#allocation11] sm:$0x3] %vm67_vm1, %v1053_v18 }
0x1610   :  { %1444 = shalt.err (!%p1441_p5)
}
0x1611   :  { %1091 = dma.vmem_to_hbm [thread:$0]  %s1089_s17, 32, %s1830_s5, [#allocation12]  }
0x1612   :  { %s1453_s25 = scalar_lea.vmem %s1099_s19, 32  ;;  %p1458_p7 = scmp.lt.s32.totalorder %s1099_s19, %s1099_s19 }
0x1613   :  { %p1454_p6 = scmp.ne.s32.totalorder %s1099_s19, %s1453_s25  ;;  %p1459_p8 = scmp.lt.s32.totalorder %s1453_s25, %s1453_s25 }
0x1615   :  { %p1460_p9 = por %p1459_p8, %p1458_p7 }
0x1617   :  { %p1461_p10 = pnand %p1460_p9, %p1454_p6 }
0x1619   :  { %1464 = shalt.err (!%p1461_p10)
}
0x161a   :  { %1101 = dma.vmem_to_hbm [thread:$0]  %s1099_s19, 32, %s1831_s6, [#allocation12]   ;;  %v1045_v19 = vpop.permute.xlu1 %1044 }
0x161b   :  { %1049 = vst.msk [vmem:[#allocation10 + $0xf] sm:$0x1] %vm206_vm4, %v1045_v19  ;;  %s1473_s28 = scalar_lea.vmem %s1805_s21, 256  ;;  %p1478_p12 = scmp.lt.s32.totalorder %s1805_s21, %s1805_s21 }
0x161c   :  { %p1474_p11 = scmp.ne.s32.totalorder %s1805_s21, %s1473_s28  ;;  %p1479_p13 = scmp.lt.s32.totalorder %s1473_s28, %s1473_s28 }
0x161e   :  { %p1480_p0 = por %p1479_p13, %p1478_p12 }
0x1620   :  { %p1481_p1 = pnand %p1480_p0, %p1474_p11 }
0x1622   :  { %1484 = shalt.err (!%p1481_p1)
}
0x1623   :  { %1081 = dma.vmem_to_hbm [thread:$0]  %s1805_s21, 256, %s1829_s4, [#allocation6], %s1503_s29, %s1503_s29, %s1504_s30  }
0x1624   :  { %1497 = dma.done.wait [#allocation6], 256  }
0x1625   :  { %1498 = vsyncadd [#allocation6], 4294967040 }
0x1626   :  { %1499 = dma.done.wait [#allocation12], 64  }
0x1627   :  { %1500 = vsyncadd [#allocation12], 4294967232 }
0x1628   :  { %1111 = vsyncpa [#allocation5], 1 }
0x1629   :  { %1112 = vsyncpa [#allocation8], 1 }
0x162a   :  { %1113 = vsyncpa [#allocation6], 1 }
0x162b   :  { %1114 = vsyncpa [#allocation12], 1 }

</bundles_post_ra>
